<compile_context>
chip_gen: v5e
topology: v5e:2x2
jax: 0.10.0
libtpu: 0.0.40
codegen_flags: <defaults>
</compile_context>

<pallas_src>
import functools
import jax
import jax.numpy as jnp
from jax.experimental import pallas as pl
from jax.experimental.pallas import tpu as pltpu

BN_EPS = 1e-5
LEAKY_SLOPE = 0.01  # nn.LeakyReLU default negative_slope


# ------------------------------ kernel bodies -------------------------------

def _act(x, kind):
    if kind == "none":
        return x
    if kind == "relu":
        return jnp.maximum(x, 0.0)
    if kind == "leaky_relu":
        return jnp.where(x >= 0, x, LEAKY_SLOPE * x)
    if kind == "tanh":
        return jnp.tanh(x)
    raise ValueError(kind)


def _gemm_kernel_factory(act1, act2, has_post):
    """out = act2(W @ act1(P) + shift) [ * post_scale + post_shift ]."""
    if has_post:
        def kernel(p_ref, w_ref, shift_ref, ps_ref, pt_ref, o_ref):
            y = jnp.dot(w_ref[...], _act(p_ref[...], act1),
                        preferred_element_type=jnp.float32)
            y = _act(y + shift_ref[...], act2)
            o_ref[...] = y * ps_ref[...] + pt_ref[...]
    else:
        def kernel(p_ref, w_ref, shift_ref, o_ref):
            y = jnp.dot(w_ref[...], _act(p_ref[...], act1),
                        preferred_element_type=jnp.float32)
            o_ref[...] = _act(y + shift_ref[...], act2)
    return kernel


def _resblock_kernel(p_ref, x_ref, w1_ref, s1_ref, w2_ref, b2_ref,
                     ps_ref, pt_ref, o_ref):
    # 3x3 conv (+bias) with BN scale folded into w1, BN shift in s1:
    t = jnp.dot(w1_ref[...], _act(p_ref[...], "leaky_relu"),
                preferred_element_type=jnp.float32) + s1_ref[...]
    t = _act(t, "leaky_relu")
    # 1x1 conv (+bias):
    y = jnp.dot(w2_ref[...], t, preferred_element_type=jnp.float32) + b2_ref[...]
    # residual add, then the *following* BatchNorm (or identity) as an affine:
    o_ref[...] = (x_ref[...] + y) * ps_ref[...] + pt_ref[...]


def _fc_kernel(h_ref, w11_ref, b11_ref, w21_ref, b21_ref, o_ref):
    # fc11 and fc21 chained in VMEM (eval reparameterize() returns mu).
    mu = jnp.dot(h_ref[...], w11_ref[...],
                 preferred_element_type=jnp.float32) + b11_ref[...]
    o_ref[...] = jnp.dot(mu, w21_ref[...],
                         preferred_element_type=jnp.float32) + b21_ref[...]


# ------------------------------ Pallas wrappers ------------------------------

def _pick_tm(m):
    # Split M into two grid steps only when large enough (lets Mosaic shard the
    # lane dimension across v7x's two TensorCores); otherwise one full block
    # (lowest per-step overhead on v5e/v6e).  Blocks are tiny vs VMEM.
    return 256 if (m % 256 == 0 and m > 256) else m


def gemm_fused(patches_t, w_rows, shift, *, act1="none", act2="none", post=None):
    """out(R, M) = act2(W(R,K) @ act1(P(K,M)) + shift(R,1)) [* ps + pt]."""
    k, m = patches_t.shape
    r, k2 = w_rows.shape
    assert k == k2
    tm = _pick_tm(m)
    in_specs = [
        pl.BlockSpec((k, tm), lambda i: (0, i)),
        pl.BlockSpec((r, k), lambda i: (0, 0)),
        pl.BlockSpec((r, 1), lambda i: (0, 0)),
    ]
    args = [patches_t, w_rows, shift.reshape(r, 1)]
    if post is not None:
        ps, pt = post
        in_specs += [pl.BlockSpec((r, 1), lambda i: (0, 0)),
                     pl.BlockSpec((r, 1), lambda i: (0, 0))]
        args += [ps.reshape(r, 1), pt.reshape(r, 1)]
    cost = pl.CostEstimate(
        flops=2 * r * k * m,
        transcendentals=(r * m if act2 == "tanh" else 0),
        bytes_accessed=4 * (k * m + r * k + 2 * r * m))
    return pl.pallas_call(
        _gemm_kernel_factory(act1, act2, post is not None),
        out_shape=jax.ShapeDtypeStruct((r, m), jnp.float32),
        grid=(m // tm,),
        in_specs=in_specs,
        out_specs=pl.BlockSpec((r, tm), lambda i: (0, i)),
        compiler_params=pltpu.CompilerParams(dimension_semantics=("parallel",)),
        cost_estimate=cost,
    )(*args)


def resblock_fused(x, rp, post_bn=None):
    """x: (C, N, H, W).  x + (LReLU -> 3x3 conv(+b) -> BN -> LReLU -> 1x1 conv(+b))(x),
    with an optional following BatchNorm fused in as a post-affine."""
    c, n, h, w = x.shape
    m = n * h * w
    patches, _ = _im2col_t(x, 3, 3, 1, 1)                 # (9C, M)
    s1, t1 = _bn_affine(rp["bn"], conv_bias=rp["b1"])
    w1 = _conv_w_rows(rp["w1"]) * s1[:, None]             # BN scale folded
    w2 = _conv_w_rows(rp["w2"])                           # (C, C) 1x1 conv
    if post_bn is not None:
        ps, pt = _bn_affine(post_bn)
    else:
        ps = jnp.ones((c,), jnp.float32)
        pt = jnp.zeros((c,), jnp.float32)
    tm = _pick_tm(m)
    cost = pl.CostEstimate(
        flops=2 * c * (9 * c) * m + 2 * c * c * m,
        transcendentals=0,
        bytes_accessed=4 * (9 * c * m + 3 * c * m + 10 * c * c))
    out = pl.pallas_call(
        _resblock_kernel,
        out_shape=jax.ShapeDtypeStruct((c, m), jnp.float32),
        grid=(m // tm,),
        in_specs=[
            pl.BlockSpec((9 * c, tm), lambda i: (0, i)),
            pl.BlockSpec((c, tm), lambda i: (0, i)),
            pl.BlockSpec((c, 9 * c), lambda i: (0, 0)),
            pl.BlockSpec((c, 1), lambda i: (0, 0)),
            pl.BlockSpec((c, c), lambda i: (0, 0)),
            pl.BlockSpec((c, 1), lambda i: (0, 0)),
            pl.BlockSpec((c, 1), lambda i: (0, 0)),
            pl.BlockSpec((c, 1), lambda i: (0, 0)),
        ],
        out_specs=pl.BlockSpec((c, tm), lambda i: (0, i)),
        compiler_params=pltpu.CompilerParams(dimension_semantics=("parallel",)),
        cost_estimate=cost,
    )(patches, x.reshape(c, m), w1, t1.reshape(c, 1), w2,
      rp["b2"].reshape(c, 1), ps.reshape(c, 1), pt.reshape(c, 1))
    return out.reshape(c, n, h, w)


def fc_fused(h1, w11, b11, w21, b21):
    """proj(N, dd) = (h1(N, dd) @ W11(dd, z) + b11) @ W21(z, dd) + b21."""
    n, dd = h1.shape
    z = w11.shape[1]
    cost = pl.CostEstimate(flops=4 * n * dd * z, transcendentals=0,
                           bytes_accessed=4 * (2 * n * dd + 2 * dd * z))
    return pl.pallas_call(
        _fc_kernel,
        out_shape=jax.ShapeDtypeStruct((n, dd), jnp.float32),
        grid=(1,),
        in_specs=[
            pl.BlockSpec((n, dd), lambda i: (0, 0)),
            pl.BlockSpec((dd, z), lambda i: (0, 0)),
            pl.BlockSpec((1, z), lambda i: (0, 0)),
            pl.BlockSpec((z, dd), lambda i: (0, 0)),
            pl.BlockSpec((1, dd), lambda i: (0, 0)),
        ],
        out_specs=pl.BlockSpec((n, dd), lambda i: (0, 0)),
        compiler_params=pltpu.CompilerParams(dimension_semantics=("arbitrary",)),
        cost_estimate=cost,
    )(h1, w11, b11.reshape(1, z), w21, b21.reshape(1, dd))


# ------------------- wrapper-side data movement (XLA only) -------------------

def _im2col_t(x, kh, kw, stride, pad):
    """x: (C, N, H, W) -> transposed patch matrix (kh*kw*C, N*Ho*Wo).
    K ordered (tap_row, tap_col, C) with C fastest; M ordered (N, Ho, Wo)."""
    c, n, h, w = x.shape
    xp = jnp.pad(x, ((0, 0), (0, 0), (pad, pad), (pad, pad)))
    ho = (h + 2 * pad - kh) // stride + 1
    wo = (w + 2 * pad - kw) // stride + 1
    taps = []
    for ki in range(kh):
        for kj in range(kw):
            taps.append(xp[:, :, ki:ki + stride * ho:stride,
                           kj:kj + stride * wo:stride])
    pt = jnp.stack(taps, axis=0)                          # (kh*kw, C, N, Ho, Wo)
    return pt.reshape(kh * kw * c, n * ho * wo), (n, ho, wo)


def _conv_w_rows(w_oihw):
    """(Cout, Cin, kh, kw) -> (Cout, kh*kw*Cin) matching _im2col_t K order."""
    cout, cin, kh, kw = w_oihw.shape
    return jnp.transpose(w_oihw, (0, 2, 3, 1)).reshape(cout, kh * kw * cin)


def _convt_subpixel_w_rows(w_ct):
    """ConvTranspose2d(k=4, s=2, p=1) weight (Cin, Cout, 4, 4) -> (4*Cout, 9*Cin)
    acting on a 3x3 / pad-1 / stride-1 patch matrix of the *input*.
    Output parity (ry, rx) gives pixels (2i+ry, 2j+rx):
      out = sum_{dy,dx,ci} w_ct[ci, co, ry+1-2dy, rx+1-2dx] * in[ci, i+dy, j+dx],
    index kept only when inside [0, 4).  Rows ordered (ry, rx, Cout)."""
    cin, cout, kh, kw = w_ct.shape
    blocks = []
    for ry in (0, 1):
        for rx in (0, 1):
            cols = []
            for dy in (-1, 0, 1):
                for dx in (-1, 0, 1):
                    ih = ry + 1 - 2 * dy
                    iw = rx + 1 - 2 * dx
                    if 0 <= ih < kh and 0 <= iw < kw:
                        cols.append(jnp.transpose(w_ct[:, :, ih, iw]))  # (Cout, Cin)
                    else:
                        cols.append(jnp.zeros((cout, cin), w_ct.dtype))
            blocks.append(jnp.concatenate(cols, axis=1))                # (Cout, 9*Cin)
    return jnp.concatenate(blocks, axis=0)                              # (4*Cout, 9*Cin)


def _interleave_subpixel(y, cout, n, h, w):
    """(4*Cout, N*H*W) rows ordered (ry, rx, Cout) -> (Cout, N, 2H, 2W)."""
    r = y.reshape(2, 2, cout, n, h, w)
    r = jnp.transpose(r, (2, 3, 4, 0, 5, 1))        # (Cout, N, H, ry, W, rx)
    return r.reshape(cout, n, 2 * h, 2 * w)


def _bn_affine(bn, conv_bias=None):
    scale = bn["g"] / jnp.sqrt(bn["v"] + BN_EPS)
    base = conv_bias if conv_bias is not None else jnp.zeros_like(bn["m"])
    shift = (base - bn["m"]) * scale + bn["b"]
    return scale, shift


# --------------------------------- forward -----------------------------------

def cvae_forward(x_nchw, p, *, d, z, f=8):
    n = x_nchw.shape[0]
    x = jnp.transpose(x_nchw, (1, 0, 2, 3)).astype(jnp.float32)   # (3, N, H, W)

    # ----- encoder -----
    # Conv(3 -> d//2, 4x4, s2, p1, no bias) + BN + ReLU      [1 kernel]
    s, t = _bn_affine(p["e_bn1"])
    patches, (_, ho, wo) = _im2col_t(x, 4, 4, 2, 1)
    h = gemm_fused(patches, _conv_w_rows(p["e_conv1_w"]) * s[:, None], t,
                   act2="relu").reshape(d // 2, n, ho, wo)

    # Conv(d//2 -> d, 4x4, s2, p1, no bias) + BN + ReLU      [1 kernel]
    s, t = _bn_affine(p["e_bn2"])
    patches, (_, ho, wo) = _im2col_t(h, 4, 4, 2, 1)
    h = gemm_fused(patches, _conv_w_rows(p["e_conv2_w"]) * s[:, None], t,
                   act2="relu").reshape(d, n, ho, wo)

    # ResBlock + following BN(d) fused, then ResBlock        [2 kernels]
    h = resblock_fused(h, p["e_rb1"], post_bn=p["e_bn3"])
    h = resblock_fused(h, p["e_rb2"])

    # ----- latent: fc11 -> (eval reparameterize == mu) -> fc21   [1 kernel]
    # PyTorch h.view(-1, d*f*f) flattens per sample in (C, H, W) order.
    h_flat = jnp.transpose(h, (1, 0, 2, 3)).reshape(n, d * f * f)
    # fc12 (logvar) is intentionally not computed: unused in the eval forward.
    proj = fc_fused(h_flat, p["fc11_w"], p["fc11_b"], p["fc21_w"], p["fc21_b"])
    g = jnp.transpose(proj.reshape(n, d, f, f), (1, 0, 2, 3))     # (d, N, f, f)

    # ----- decoder -----
    g = resblock_fused(g, p["d_rb1"], post_bn=p["d_bn1"])         # [2 kernels]
    g = resblock_fused(g, p["d_rb2"], post_bn=p["d_bn2"])

    # ConvT(d -> d//2, 4x4, s2, p1, no bias) + BN + LeakyReLU [1 kernel]
    s, t = _bn_affine(p["d_bn3"])
    patches, _ = _im2col_t(g, 3, 3, 1, 1)
    w_sp = _convt_subpixel_w_rows(p["d_convt1_w"]) * jnp.tile(s, 4)[:, None]
    y = gemm_fused(patches, w_sp, jnp.tile(t, 4), act2="leaky_relu")
    g = _interleave_subpixel(y, d // 2, n, f, f)                  # (d//2, N, 2f, 2f)

    # ConvT(d//2 -> 3, 4x4, s2, p1, no bias) + tanh + xi_bn   [1 kernel]
    s, t = _bn_affine(p["xi_bn"])
    patches, _ = _im2col_t(g, 3, 3, 1, 1)
    w_sp = _convt_subpixel_w_rows(p["d_convt2_w"])
    cout2 = p["d_convt2_w"].shape[1]
    y = gemm_fused(patches, w_sp, jnp.zeros((4 * cout2,), jnp.float32),
                   act2="tanh", post=(jnp.tile(s, 4), jnp.tile(t, 4)))
    xi = _interleave_subpixel(y, cout2, n, 2 * f, 2 * f)          # (3, N, 4f, 4f)
    return jnp.transpose(xi, (1, 0, 2, 3))                        # NHWC-free: NCHW out


# --------------------------- deterministic init ------------------------------

def _bn_params(c):
    return {"g": jnp.ones((c,), jnp.float32), "b": jnp.zeros((c,), jnp.float32),
            "m": jnp.zeros((c,), jnp.float32), "v": jnp.ones((c,), jnp.float32)}


def init_params(key, d, z, f=8):
    keys = iter(jax.random.split(key, 32))

    def w(shape, scale=0.05):
        return scale * jax.random.normal(next(keys), shape, jnp.float32)

    def rb(c):
        return {"w1": w((c, c, 3, 3)), "b1": w((c,)),
                "bn": _bn_params(c),
                "w2": w((c, c, 1, 1)), "b2": w((c,))}

    dd = d * f * f
    return {
        "e_conv1_w": w((d // 2, 3, 4, 4)), "e_bn1": _bn_params(d // 2),
        "e_conv2_w": w((d, d // 2, 4, 4)), "e_bn2": _bn_params(d),
        "e_rb1": rb(d), "e_bn3": _bn_params(d), "e_rb2": rb(d),
        # Linear weights stored matmul-ready as (in, out)
        "fc11_w": w((dd, z)), "fc11_b": w((z,)),
        "fc12_w": w((dd, z)), "fc12_b": w((z,)),   # present in the module, unused in eval forward
        "fc21_w": w((z, dd)), "fc21_b": w((dd,)),
        # ConvTranspose2d weights in PyTorch (Cin, Cout, kh, kw) layout, bias=False
        "d_rb1": rb(d), "d_bn1": _bn_params(d),
        "d_rb2": rb(d), "d_bn2": _bn_params(d),
        "d_convt1_w": w((d, d // 2, 4, 4)), "d_bn3": _bn_params(d // 2),
        "d_convt2_w": w((d // 2, 3, 4, 4)),
        "xi_bn": _bn_params(3),
    }


# ------------------------------------ main -----------------------------------

if __name__ == "__main__":
    d, zdim, f = 16, 16, 8            # f=8 => two stride-2 convs => 32x32 input
    key = jax.random.PRNGKey(0)
    pkey, xkey = jax.random.split(key)
    params = init_params(pkey, d, zdim, f)
    x = jax.random.normal(xkey, (2, 3, 32, 32), jnp.float32)   # NCHW like PyTorch

    fwd = jax.jit(functools.partial(cvae_forward, d=d, z=zdim, f=f))
    out = jax.block_until_ready(fwd(x, params))
    assert out.shape == (2, 3, 32, 32) and out.dtype == jnp.float32
    print("KERNEL_OK")
</pallas_src>

<mosaic_0001>
module attributes {stable_mosaic.version = 11 : i64} {
  func.func @kernel(%arg0: i32, %arg1: memref<48x256xf32, #tpu.memory_space<vmem>>, %arg2: memref<8x48xf32, #tpu.memory_space<vmem>>, %arg3: memref<8x1xf32, #tpu.memory_space<vmem>>, %arg4: memref<8x256xf32, #tpu.memory_space<vmem>>) attributes {dimension_semantics = [#tpu.dimension_semantics<parallel>], iteration_bounds = array<i64: 2>, scalar_prefetch = 0 : i64, scratch_operands = 0 : i64, tpu.core_type = #tpu.core_type<tc>, window_params = [{transform_indices = @transform_0, window_bounds = array<i64: 48, 256>}, {pipeline_mode = #tpu.pipeline_mode<synchronous>, transform_indices = @transform_1, window_bounds = array<i64: 8, 48>}, {pipeline_mode = #tpu.pipeline_mode<synchronous>, transform_indices = @transform_2, window_bounds = array<i64: 8, 1>}, {transform_indices = @transform_3, window_bounds = array<i64: 8, 256>}]} {
    %c0 = arith.constant 0 : index
    %c0_0 = arith.constant 0 : index
    %0 = vector.load %arg2[%c0, %c0_0] : memref<8x48xf32, #tpu.memory_space<vmem>>, vector<8x48xf32>
    %c0_1 = arith.constant 0 : index
    %c0_2 = arith.constant 0 : index
    %1 = vector.load %arg1[%c0_1, %c0_2] : memref<48x256xf32, #tpu.memory_space<vmem>>, vector<48x256xf32>
    %cst = arith.constant dense<0.000000e+00> : vector<8x256xf32>
    %2 = tpu.matmul %0, %1, %cst {dimension_numbers = #tpu.dot_dimension_numbers<[1], [0], [0], [1], [0, 0, 1, 1], [], []>} : vector<8x48xf32>, vector<48x256xf32>, vector<8x256xf32> -> vector<8x256xf32>
    %c0_3 = arith.constant 0 : index
    %c0_4 = arith.constant 0 : index
    %3 = vector.load %arg3[%c0_3, %c0_4] : memref<8x1xf32, #tpu.memory_space<vmem>>, vector<8x1xf32>
    %4 = vector.broadcast %3 : vector<8x1xf32> to vector<8x256xf32>
    %5 = arith.addf %2, %4 : vector<8x256xf32>
    %cst_5 = arith.constant 0.000000e+00 : f32
    %6 = vector.broadcast %cst_5 : f32 to vector<8x256xf32>
    %7 = arith.maximumf %5, %6 : vector<8x256xf32>
    %c0_6 = arith.constant 0 : index
    %c0_7 = arith.constant 0 : index
    %8 = vector.load %arg4[%c0_6, %c0_7] : memref<8x256xf32, #tpu.memory_space<vmem>>, vector<8x256xf32>
    tpu.vector_store %arg4[%c0_6, %c0_7], %7 {strides = array<i32>} : memref<8x256xf32, #tpu.memory_space<vmem>>, vector<8x256xf32>,
    return
  }
  func.func @transform_0(%arg0: i32) -> (i32, i32) {
    %c0_i32 = arith.constant 0 : i32
    %c0_i32_0 = arith.constant 0 : i32
    return %c0_i32, %arg0 : i32, i32
  }
  func.func @transform_1(%arg0: i32) -> (i32, i32) {
    %c0_i32 = arith.constant 0 : i32
    %c0_i32_0 = arith.constant 0 : i32
    %c0_i32_1 = arith.constant 0 : i32
    return %c0_i32, %c0_i32_0 : i32, i32
  }
  func.func @transform_2(%arg0: i32) -> (i32, i32) {
    %c0_i32 = arith.constant 0 : i32
    %c0_i32_0 = arith.constant 0 : i32
    %c0_i32_1 = arith.constant 0 : i32
    return %c0_i32, %c0_i32_0 : i32, i32
  }
  func.func @transform_3(%arg0: i32) -> (i32, i32) {
    %c0_i32 = arith.constant 0 : i32
    %c0_i32_0 = arith.constant 0 : i32
    return %c0_i32, %arg0 : i32, i32
  }
}

module attributes {stable_mosaic.version = 11 : i64} {
  func.func @kernel(%arg0: i32, %arg1: memref<128x128xf32, #tpu.memory_space<vmem>>, %arg2: memref<16x128xf32, #tpu.memory_space<vmem>>, %arg3: memref<16x1xf32, #tpu.memory_space<vmem>>, %arg4: memref<16x128xf32, #tpu.memory_space<vmem>>) attributes {dimension_semantics = [#tpu.dimension_semantics<parallel>], iteration_bounds = array<i64: 1>, scalar_prefetch = 0 : i64, scratch_operands = 0 : i64, tpu.core_type = #tpu.core_type<tc>, window_params = [{transform_indices = @transform_0, window_bounds = array<i64: 128, 128>}, {pipeline_mode = #tpu.pipeline_mode<synchronous>, transform_indices = @transform_1, window_bounds = array<i64: 16, 128>}, {pipeline_mode = #tpu.pipeline_mode<synchronous>, transform_indices = @transform_2, window_bounds = array<i64: 16, 1>}, {transform_indices = @transform_3, window_bounds = array<i64: 16, 128>}]} {
    %c0 = arith.constant 0 : index
    %c0_0 = arith.constant 0 : index
    %0 = vector.load %arg2[%c0, %c0_0] : memref<16x128xf32, #tpu.memory_space<vmem>>, vector<16x128xf32>
    %c0_1 = arith.constant 0 : index
    %c0_2 = arith.constant 0 : index
    %1 = vector.load %arg1[%c0_1, %c0_2] : memref<128x128xf32, #tpu.memory_space<vmem>>, vector<128x128xf32>
    %cst = arith.constant dense<0.000000e+00> : vector<16x128xf32>
    %2 = tpu.matmul %0, %1, %cst {dimension_numbers = #tpu.dot_dimension_numbers<[1], [0], [0], [1], [0, 0, 1, 1], [], []>} : vector<16x128xf32>, vector<128x128xf32>, vector<16x128xf32> -> vector<16x128xf32>
    %c0_3 = arith.constant 0 : index
    %c0_4 = arith.constant 0 : index
    %3 = vector.load %arg3[%c0_3, %c0_4] : memref<16x1xf32, #tpu.memory_space<vmem>>, vector<16x1xf32>
    %4 = vector.broadcast %3 : vector<16x1xf32> to vector<16x128xf32>
    %5 = arith.addf %2, %4 : vector<16x128xf32>
    %cst_5 = arith.constant 0.000000e+00 : f32
    %6 = vector.broadcast %cst_5 : f32 to vector<16x128xf32>
    %7 = arith.maximumf %5, %6 : vector<16x128xf32>
    %c0_6 = arith.constant 0 : index
    %c0_7 = arith.constant 0 : index
    %8 = vector.load %arg4[%c0_6, %c0_7] : memref<16x128xf32, #tpu.memory_space<vmem>>, vector<16x128xf32>
    tpu.vector_store %arg4[%c0_6, %c0_7], %7 {strides = array<i32>} : memref<16x128xf32, #tpu.memory_space<vmem>>, vector<16x128xf32>,
    return
  }
  func.func @transform_0(%arg0: i32) -> (i32, i32) {
    %c0_i32 = arith.constant 0 : i32
    %c0_i32_0 = arith.constant 0 : i32
    return %c0_i32, %arg0 : i32, i32
  }
  func.func @transform_1(%arg0: i32) -> (i32, i32) {
    %c0_i32 = arith.constant 0 : i32
    %c0_i32_0 = arith.constant 0 : i32
    %c0_i32_1 = arith.constant 0 : i32
    return %c0_i32, %c0_i32_0 : i32, i32
  }
  func.func @transform_2(%arg0: i32) -> (i32, i32) {
    %c0_i32 = arith.constant 0 : i32
    %c0_i32_0 = arith.constant 0 : i32
    %c0_i32_1 = arith.constant 0 : i32
    return %c0_i32, %c0_i32_0 : i32, i32
  }
  func.func @transform_3(%arg0: i32) -> (i32, i32) {
    %c0_i32 = arith.constant 0 : i32
    %c0_i32_0 = arith.constant 0 : i32
    return %c0_i32, %arg0 : i32, i32
  }
}

module attributes {stable_mosaic.version = 11 : i64} {
  func.func @_resblock_kernel(%arg0: i32, %arg1: memref<144x128xf32, #tpu.memory_space<vmem>>, %arg2: memref<16x128xf32, #tpu.memory_space<vmem>>, %arg3: memref<16x144xf32, #tpu.memory_space<vmem>>, %arg4: memref<16x1xf32, #tpu.memory_space<vmem>>, %arg5: memref<16x16xf32, #tpu.memory_space<vmem>>, %arg6: memref<16x1xf32, #tpu.memory_space<vmem>>, %arg7: memref<16x1xf32, #tpu.memory_space<vmem>>, %arg8: memref<16x1xf32, #tpu.memory_space<vmem>>, %arg9: memref<16x128xf32, #tpu.memory_space<vmem>>) attributes {dimension_semantics = [#tpu.dimension_semantics<parallel>], iteration_bounds = array<i64: 1>, scalar_prefetch = 0 : i64, scratch_operands = 0 : i64, tpu.core_type = #tpu.core_type<tc>, window_params = [{transform_indices = @transform_0, window_bounds = array<i64: 144, 128>}, {transform_indices = @transform_1, window_bounds = array<i64: 16, 128>}, {pipeline_mode = #tpu.pipeline_mode<synchronous>, transform_indices = @transform_2, window_bounds = array<i64: 16, 144>}, {pipeline_mode = #tpu.pipeline_mode<synchronous>, transform_indices = @transform_3, window_bounds = array<i64: 16, 1>}, {pipeline_mode = #tpu.pipeline_mode<synchronous>, transform_indices = @transform_4, window_bounds = array<i64: 16, 16>}, {pipeline_mode = #tpu.pipeline_mode<synchronous>, transform_indices = @transform_5, window_bounds = array<i64: 16, 1>}, {pipeline_mode = #tpu.pipeline_mode<synchronous>, transform_indices = @transform_6, window_bounds = array<i64: 16, 1>}, {pipeline_mode = #tpu.pipeline_mode<synchronous>, transform_indices = @transform_7, window_bounds = array<i64: 16, 1>}, {transform_indices = @transform_8, window_bounds = array<i64: 16, 128>}]} {
    %c0 = arith.constant 0 : index
    %c0_0 = arith.constant 0 : index
    %0 = vector.load %arg3[%c0, %c0_0] : memref<16x144xf32, #tpu.memory_space<vmem>>, vector<16x144xf32>
    %c0_1 = arith.constant 0 : index
    %c0_2 = arith.constant 0 : index
    %1 = vector.load %arg1[%c0_1, %c0_2] : memref<144x128xf32, #tpu.memory_space<vmem>>, vector<144x128xf32>
    %cst = arith.constant 0.000000e+00 : f32
    %2 = vector.broadcast %cst : f32 to vector<144x128xf32>
    %3 = arith.cmpf oge, %1, %2 : vector<144x128xf32>
    %cst_3 = arith.constant 0.00999999977 : f32
    %4 = vector.broadcast %cst_3 : f32 to vector<144x128xf32>
    %5 = arith.mulf %4, %1 : vector<144x128xf32>
    %6 = arith.select %3, %1, %5 : vector<144x128xi1>, vector<144x128xf32>
    %cst_4 = arith.constant dense<0.000000e+00> : vector<16x128xf32>
    %7 = tpu.matmul %0, %6, %cst_4 {dimension_numbers = #tpu.dot_dimension_numbers<[1], [0], [0], [1], [0, 0, 1, 1], [], []>} : vector<16x144xf32>, vector<144x128xf32>, vector<16x128xf32> -> vector<16x128xf32>
    %c0_5 = arith.constant 0 : index
    %c0_6 = arith.constant 0 : index
    %8 = vector.load %arg4[%c0_5, %c0_6] : memref<16x1xf32, #tpu.memory_space<vmem>>, vector<16x1xf32>
    %9 = vector.broadcast %8 : vector<16x1xf32> to vector<16x128xf32>
    %10 = arith.addf %7, %9 : vector<16x128xf32>
    %cst_7 = arith.constant 0.000000e+00 : f32
    %11 = vector.broadcast %cst_7 : f32 to vector<16x128xf32>
    %12 = arith.cmpf oge, %10, %11 : vector<16x128xf32>
    %cst_8 = arith.constant 0.00999999977 : f32
    %13 = vector.broadcast %cst_8 : f32 to vector<16x128xf32>
    %14 = arith.mulf %13, %10 : vector<16x128xf32>
    %15 = arith.select %12, %10, %14 : vector<16x128xi1>, vector<16x128xf32>
    %c0_9 = arith.constant 0 : index
    %c0_10 = arith.constant 0 : index
    %16 = vector.load %arg5[%c0_9, %c0_10] : memref<16x16xf32, #tpu.memory_space<vmem>>, vector<16x16xf32>
    %cst_11 = arith.constant dense<0.000000e+00> : vector<16x128xf32>
    %17 = tpu.matmul %16, %15, %cst_11 {dimension_numbers = #tpu.dot_dimension_numbers<[1], [0], [0], [1], [0, 0, 1, 1], [], []>} : vector<16x16xf32>, vector<16x128xf32>, vector<16x128xf32> -> vector<16x128xf32>
    %c0_12 = arith.constant 0 : index
    %c0_13 = arith.constant 0 : index
    %18 = vector.load %arg6[%c0_12, %c0_13] : memref<16x1xf32, #tpu.memory_space<vmem>>, vector<16x1xf32>
    %19 = vector.broadcast %18 : vector<16x1xf32> to vector<16x128xf32>
    %20 = arith.addf %17, %19 : vector<16x128xf32>
    %c0_14 = arith.constant 0 : index
    %c0_15 = arith.constant 0 : index
    %21 = vector.load %arg2[%c0_14, %c0_15] : memref<16x128xf32, #tpu.memory_space<vmem>>, vector<16x128xf32>
    %22 = arith.addf %21, %20 : vector<16x128xf32>
    %c0_16 = arith.constant 0 : index
    %c0_17 = arith.constant 0 : index
    %23 = vector.load %arg7[%c0_16, %c0_17] : memref<16x1xf32, #tpu.memory_space<vmem>>, vector<16x1xf32>
    %24 = vector.broadcast %23 : vector<16x1xf32> to vector<16x128xf32>
    %25 = arith.mulf %22, %24 : vector<16x128xf32>
    %c0_18 = arith.constant 0 : index
    %c0_19 = arith.constant 0 : index
    %26 = vector.load %arg8[%c0_18, %c0_19] : memref<16x1xf32, #tpu.memory_space<vmem>>, vector<16x1xf32>
    %27 = vector.broadcast %26 : vector<16x1xf32> to vector<16x128xf32>
    %28 = arith.addf %25, %27 : vector<16x128xf32>
    %c0_20 = arith.constant 0 : index
    %c0_21 = arith.constant 0 : index
    %29 = vector.load %arg9[%c0_20, %c0_21] : memref<16x128xf32, #tpu.memory_space<vmem>>, vector<16x128xf32>
    tpu.vector_store %arg9[%c0_20, %c0_21], %28 {strides = array<i32>} : memref<16x128xf32, #tpu.memory_space<vmem>>, vector<16x128xf32>,
    return
  }
  func.func @transform_0(%arg0: i32) -> (i32, i32) {
    %c0_i32 = arith.constant 0 : i32
    %c0_i32_0 = arith.constant 0 : i32
    return %c0_i32, %arg0 : i32, i32
  }
  func.func @transform_1(%arg0: i32) -> (i32, i32) {
    %c0_i32 = arith.constant 0 : i32
    %c0_i32_0 = arith.constant 0 : i32
    return %c0_i32, %arg0 : i32, i32
  }
  func.func @transform_2(%arg0: i32) -> (i32, i32) {
    %c0_i32 = arith.constant 0 : i32
    %c0_i32_0 = arith.constant 0 : i32
    %c0_i32_1 = arith.constant 0 : i32
    return %c0_i32, %c0_i32_0 : i32, i32
  }
  func.func @transform_3(%arg0: i32) -> (i32, i32) {
    %c0_i32 = arith.constant 0 : i32
    %c0_i32_0 = arith.constant 0 : i32
    %c0_i32_1 = arith.constant 0 : i32
    return %c0_i32, %c0_i32_0 : i32, i32
  }
  func.func @transform_4(%arg0: i32) -> (i32, i32) {
    %c0_i32 = arith.constant 0 : i32
    %c0_i32_0 = arith.constant 0 : i32
    %c0_i32_1 = arith.constant 0 : i32
    return %c0_i32, %c0_i32_0 : i32, i32
  }
  func.func @transform_5(%arg0: i32) -> (i32, i32) {
    %c0_i32 = arith.constant 0 : i32
    %c0_i32_0 = arith.constant 0 : i32
    %c0_i32_1 = arith.constant 0 : i32
    return %c0_i32, %c0_i32_0 : i32, i32
  }
  func.func @transform_6(%arg0: i32) -> (i32, i32) {
    %c0_i32 = arith.constant 0 : i32
    %c0_i32_0 = arith.constant 0 : i32
    %c0_i32_1 = arith.constant 0 : i32
    return %c0_i32, %c0_i32_0 : i32, i32
  }
  func.func @transform_7(%arg0: i32) -> (i32, i32) {
    %c0_i32 = arith.constant 0 : i32
    %c0_i32_0 = arith.constant 0 : i32
    %c0_i32_1 = arith.constant 0 : i32
    return %c0_i32, %c0_i32_0 : i32, i32
  }
  func.func @transform_8(%arg0: i32) -> (i32, i32) {
    %c0_i32 = arith.constant 0 : i32
    %c0_i32_0 = arith.constant 0 : i32
    return %c0_i32, %arg0 : i32, i32
  }
}

module attributes {stable_mosaic.version = 11 : i64} {
  func.func @_fc_kernel(%arg0: i32, %arg1: memref<2x1024xf32, #tpu.memory_space<vmem>>, %arg2: memref<1024x16xf32, #tpu.memory_space<vmem>>, %arg3: memref<1x16xf32, #tpu.memory_space<vmem>>, %arg4: memref<16x1024xf32, #tpu.memory_space<vmem>>, %arg5: memref<1x1024xf32, #tpu.memory_space<vmem>>, %arg6: memref<2x1024xf32, #tpu.memory_space<vmem>>) attributes {dimension_semantics = [#tpu.dimension_semantics<arbitrary>], iteration_bounds = array<i64: 1>, scalar_prefetch = 0 : i64, scratch_operands = 0 : i64, tpu.core_type = #tpu.core_type<tc>, window_params = [{pipeline_mode = #tpu.pipeline_mode<synchronous>, transform_indices = @transform_0, window_bounds = array<i64: 2, 1024>}, {pipeline_mode = #tpu.pipeline_mode<synchronous>, transform_indices = @transform_1, window_bounds = array<i64: 1024, 16>}, {pipeline_mode = #tpu.pipeline_mode<synchronous>, transform_indices = @transform_2, window_bounds = array<i64: 1, 16>}, {pipeline_mode = #tpu.pipeline_mode<synchronous>, transform_indices = @transform_3, window_bounds = array<i64: 16, 1024>}, {pipeline_mode = #tpu.pipeline_mode<synchronous>, transform_indices = @transform_4, window_bounds = array<i64: 1, 1024>}, {pipeline_mode = #tpu.pipeline_mode<synchronous>, transform_indices = @transform_5, window_bounds = array<i64: 2, 1024>}]} {
    %c0 = arith.constant 0 : index
    %c0_0 = arith.constant 0 : index
    %0 = vector.load %arg1[%c0, %c0_0] : memref<2x1024xf32, #tpu.memory_space<vmem>>, vector<2x1024xf32>
    %c0_1 = arith.constant 0 : index
    %c0_2 = arith.constant 0 : index
    %1 = vector.load %arg2[%c0_1, %c0_2] : memref<1024x16xf32, #tpu.memory_space<vmem>>, vector<1024x16xf32>
    %cst = arith.constant dense<0.000000e+00> : vector<2x16xf32>
    %2 = tpu.matmul %0, %1, %cst {dimension_numbers = #tpu.dot_dimension_numbers<[1], [0], [0], [1], [0, 0, 1, 1], [], []>} : vector<2x1024xf32>, vector<1024x16xf32>, vector<2x16xf32> -> vector<2x16xf32>
    %c0_3 = arith.constant 0 : index
    %c0_4 = arith.constant 0 : index
    %3 = vector.load %arg3[%c0_3, %c0_4] : memref<1x16xf32, #tpu.memory_space<vmem>>, vector<1x16xf32>
    %4 = vector.broadcast %3 : vector<1x16xf32> to vector<2x16xf32>
    %5 = arith.addf %2, %4 : vector<2x16xf32>
    %c0_5 = arith.constant 0 : index
    %c0_6 = arith.constant 0 : index
    %6 = vector.load %arg4[%c0_5, %c0_6] : memref<16x1024xf32, #tpu.memory_space<vmem>>, vector<16x1024xf32>
    %cst_7 = arith.constant dense<0.000000e+00> : vector<2x1024xf32>
    %7 = tpu.matmul %5, %6, %cst_7 {dimension_numbers = #tpu.dot_dimension_numbers<[1], [0], [0], [1], [0, 0, 1, 1], [], []>} : vector<2x16xf32>, vector<16x1024xf32>, vector<2x1024xf32> -> vector<2x1024xf32>
    %c0_8 = arith.constant 0 : index
    %c0_9 = arith.constant 0 : index
    %8 = vector.load %arg5[%c0_8, %c0_9] : memref<1x1024xf32, #tpu.memory_space<vmem>>, vector<1x1024xf32>
    %9 = vector.broadcast %8 : vector<1x1024xf32> to vector<2x1024xf32>
    %10 = arith.addf %7, %9 : vector<2x1024xf32>
    %c0_10 = arith.constant 0 : index
    %c0_11 = arith.constant 0 : index
    %11 = vector.load %arg6[%c0_10, %c0_11] : memref<2x1024xf32, #tpu.memory_space<vmem>>, vector<2x1024xf32>
    tpu.vector_store %arg6[%c0_10, %c0_11], %10 {strides = array<i32>} : memref<2x1024xf32, #tpu.memory_space<vmem>>, vector<2x1024xf32>,
    return
  }
  func.func @transform_0(%arg0: i32) -> (i32, i32) {
    %c0_i32 = arith.constant 0 : i32
    %c0_i32_0 = arith.constant 0 : i32
    %c0_i32_1 = arith.constant 0 : i32
    return %c0_i32, %c0_i32_0 : i32, i32
  }
  func.func @transform_1(%arg0: i32) -> (i32, i32) {
    %c0_i32 = arith.constant 0 : i32
    %c0_i32_0 = arith.constant 0 : i32
    %c0_i32_1 = arith.constant 0 : i32
    return %c0_i32, %c0_i32_0 : i32, i32
  }
  func.func @transform_2(%arg0: i32) -> (i32, i32) {
    %c0_i32 = arith.constant 0 : i32
    %c0_i32_0 = arith.constant 0 : i32
    %c0_i32_1 = arith.constant 0 : i32
    return %c0_i32, %c0_i32_0 : i32, i32
  }
  func.func @transform_3(%arg0: i32) -> (i32, i32) {
    %c0_i32 = arith.constant 0 : i32
    %c0_i32_0 = arith.constant 0 : i32
    %c0_i32_1 = arith.constant 0 : i32
    return %c0_i32, %c0_i32_0 : i32, i32
  }
  func.func @transform_4(%arg0: i32) -> (i32, i32) {
    %c0_i32 = arith.constant 0 : i32
    %c0_i32_0 = arith.constant 0 : i32
    %c0_i32_1 = arith.constant 0 : i32
    return %c0_i32, %c0_i32_0 : i32, i32
  }
  func.func @transform_5(%arg0: i32) -> (i32, i32) {
    %c0_i32 = arith.constant 0 : i32
    %c0_i32_0 = arith.constant 0 : i32
    %c0_i32_1 = arith.constant 0 : i32
    return %c0_i32, %c0_i32_0 : i32, i32
  }
}

module attributes {stable_mosaic.version = 11 : i64} {
  func.func @kernel(%arg0: i32, %arg1: memref<144x128xf32, #tpu.memory_space<vmem>>, %arg2: memref<32x144xf32, #tpu.memory_space<vmem>>, %arg3: memref<32x1xf32, #tpu.memory_space<vmem>>, %arg4: memref<32x128xf32, #tpu.memory_space<vmem>>) attributes {dimension_semantics = [#tpu.dimension_semantics<parallel>], iteration_bounds = array<i64: 1>, scalar_prefetch = 0 : i64, scratch_operands = 0 : i64, tpu.core_type = #tpu.core_type<tc>, window_params = [{transform_indices = @transform_0, window_bounds = array<i64: 144, 128>}, {pipeline_mode = #tpu.pipeline_mode<synchronous>, transform_indices = @transform_1, window_bounds = array<i64: 32, 144>}, {pipeline_mode = #tpu.pipeline_mode<synchronous>, transform_indices = @transform_2, window_bounds = array<i64: 32, 1>}, {transform_indices = @transform_3, window_bounds = array<i64: 32, 128>}]} {
    %c0 = arith.constant 0 : index
    %c0_0 = arith.constant 0 : index
    %0 = vector.load %arg2[%c0, %c0_0] : memref<32x144xf32, #tpu.memory_space<vmem>>, vector<32x144xf32>
    %c0_1 = arith.constant 0 : index
    %c0_2 = arith.constant 0 : index
    %1 = vector.load %arg1[%c0_1, %c0_2] : memref<144x128xf32, #tpu.memory_space<vmem>>, vector<144x128xf32>
    %cst = arith.constant dense<0.000000e+00> : vector<32x128xf32>
    %2 = tpu.matmul %0, %1, %cst {dimension_numbers = #tpu.dot_dimension_numbers<[1], [0], [0], [1], [0, 0, 1, 1], [], []>} : vector<32x144xf32>, vector<144x128xf32>, vector<32x128xf32> -> vector<32x128xf32>
    %c0_3 = arith.constant 0 : index
    %c0_4 = arith.constant 0 : index
    %3 = vector.load %arg3[%c0_3, %c0_4] : memref<32x1xf32, #tpu.memory_space<vmem>>, vector<32x1xf32>
    %4 = vector.broadcast %3 : vector<32x1xf32> to vector<32x128xf32>
    %5 = arith.addf %2, %4 : vector<32x128xf32>
    %cst_5 = arith.constant 0.000000e+00 : f32
    %6 = vector.broadcast %cst_5 : f32 to vector<32x128xf32>
    %7 = arith.cmpf oge, %5, %6 : vector<32x128xf32>
    %cst_6 = arith.constant 0.00999999977 : f32
    %8 = vector.broadcast %cst_6 : f32 to vector<32x128xf32>
    %9 = arith.mulf %8, %5 : vector<32x128xf32>
    %10 = arith.select %7, %5, %9 : vector<32x128xi1>, vector<32x128xf32>
    %c0_7 = arith.constant 0 : index
    %c0_8 = arith.constant 0 : index
    %11 = vector.load %arg4[%c0_7, %c0_8] : memref<32x128xf32, #tpu.memory_space<vmem>>, vector<32x128xf32>
    tpu.vector_store %arg4[%c0_7, %c0_8], %10 {strides = array<i32>} : memref<32x128xf32, #tpu.memory_space<vmem>>, vector<32x128xf32>,
    return
  }
  func.func @transform_0(%arg0: i32) -> (i32, i32) {
    %c0_i32 = arith.constant 0 : i32
    %c0_i32_0 = arith.constant 0 : i32
    return %c0_i32, %arg0 : i32, i32
  }
  func.func @transform_1(%arg0: i32) -> (i32, i32) {
    %c0_i32 = arith.constant 0 : i32
    %c0_i32_0 = arith.constant 0 : i32
    %c0_i32_1 = arith.constant 0 : i32
    return %c0_i32, %c0_i32_0 : i32, i32
  }
  func.func @transform_2(%arg0: i32) -> (i32, i32) {
    %c0_i32 = arith.constant 0 : i32
    %c0_i32_0 = arith.constant 0 : i32
    %c0_i32_1 = arith.constant 0 : i32
    return %c0_i32, %c0_i32_0 : i32, i32
  }
  func.func @transform_3(%arg0: i32) -> (i32, i32) {
    %c0_i32 = arith.constant 0 : i32
    %c0_i32_0 = arith.constant 0 : i32
    return %c0_i32, %arg0 : i32, i32
  }
}

module attributes {stable_mosaic.version = 11 : i64} {
  func.func @kernel(%arg0: i32, %arg1: memref<72x256xf32, #tpu.memory_space<vmem>>, %arg2: memref<12x72xf32, #tpu.memory_space<vmem>>, %arg3: memref<12x1xf32, #tpu.memory_space<vmem>>, %arg4: memref<12x1xf32, #tpu.memory_space<vmem>>, %arg5: memref<12x1xf32, #tpu.memory_space<vmem>>, %arg6: memref<12x256xf32, #tpu.memory_space<vmem>>) attributes {dimension_semantics = [#tpu.dimension_semantics<parallel>], iteration_bounds = array<i64: 2>, scalar_prefetch = 0 : i64, scratch_operands = 0 : i64, tpu.core_type = #tpu.core_type<tc>, window_params = [{transform_indices = @transform_0, window_bounds = array<i64: 72, 256>}, {pipeline_mode = #tpu.pipeline_mode<synchronous>, transform_indices = @transform_1, window_bounds = array<i64: 12, 72>}, {pipeline_mode = #tpu.pipeline_mode<synchronous>, transform_indices = @transform_2, window_bounds = array<i64: 12, 1>}, {pipeline_mode = #tpu.pipeline_mode<synchronous>, transform_indices = @transform_3, window_bounds = array<i64: 12, 1>}, {pipeline_mode = #tpu.pipeline_mode<synchronous>, transform_indices = @transform_4, window_bounds = array<i64: 12, 1>}, {transform_indices = @transform_5, window_bounds = array<i64: 12, 256>}]} {
    %c0 = arith.constant 0 : index
    %c0_0 = arith.constant 0 : index
    %0 = vector.load %arg2[%c0, %c0_0] : memref<12x72xf32, #tpu.memory_space<vmem>>, vector<12x72xf32>
    %c0_1 = arith.constant 0 : index
    %c0_2 = arith.constant 0 : index
    %1 = vector.load %arg1[%c0_1, %c0_2] : memref<72x256xf32, #tpu.memory_space<vmem>>, vector<72x256xf32>
    %cst = arith.constant dense<0.000000e+00> : vector<12x256xf32>
    %2 = tpu.matmul %0, %1, %cst {dimension_numbers = #tpu.dot_dimension_numbers<[1], [0], [0], [1], [0, 0, 1, 1], [], []>} : vector<12x72xf32>, vector<72x256xf32>, vector<12x256xf32> -> vector<12x256xf32>
    %c0_3 = arith.constant 0 : index
    %c0_4 = arith.constant 0 : index
    %3 = vector.load %arg3[%c0_3, %c0_4] : memref<12x1xf32, #tpu.memory_space<vmem>>, vector<12x1xf32>
    %4 = vector.broadcast %3 : vector<12x1xf32> to vector<12x256xf32>
    %5 = arith.addf %2, %4 : vector<12x256xf32>
    %6 = math.tanh %5 : vector<12x256xf32>
    %c0_5 = arith.constant 0 : index
    %c0_6 = arith.constant 0 : index
    %7 = vector.load %arg4[%c0_5, %c0_6] : memref<12x1xf32, #tpu.memory_space<vmem>>, vector<12x1xf32>
    %8 = vector.broadcast %7 : vector<12x1xf32> to vector<12x256xf32>
    %9 = arith.mulf %6, %8 : vector<12x256xf32>
    %c0_7 = arith.constant 0 : index
    %c0_8 = arith.constant 0 : index
    %10 = vector.load %arg5[%c0_7, %c0_8] : memref<12x1xf32, #tpu.memory_space<vmem>>, vector<12x1xf32>
    %11 = vector.broadcast %10 : vector<12x1xf32> to vector<12x256xf32>
    %12 = arith.addf %9, %11 : vector<12x256xf32>
    %c0_9 = arith.constant 0 : index
    %c0_10 = arith.constant 0 : index
    %13 = vector.load %arg6[%c0_9, %c0_10] : memref<12x256xf32, #tpu.memory_space<vmem>>, vector<12x256xf32>
    tpu.vector_store %arg6[%c0_9, %c0_10], %12 {strides = array<i32>} : memref<12x256xf32, #tpu.memory_space<vmem>>, vector<12x256xf32>,
    return
  }
  func.func @transform_0(%arg0: i32) -> (i32, i32) {
    %c0_i32 = arith.constant 0 : i32
    %c0_i32_0 = arith.constant 0 : i32
    return %c0_i32, %arg0 : i32, i32
  }
  func.func @transform_1(%arg0: i32) -> (i32, i32) {
    %c0_i32 = arith.constant 0 : i32
    %c0_i32_0 = arith.constant 0 : i32
    %c0_i32_1 = arith.constant 0 : i32
    return %c0_i32, %c0_i32_0 : i32, i32
  }
  func.func @transform_2(%arg0: i32) -> (i32, i32) {
    %c0_i32 = arith.constant 0 : i32
    %c0_i32_0 = arith.constant 0 : i32
    %c0_i32_1 = arith.constant 0 : i32
    return %c0_i32, %c0_i32_0 : i32, i32
  }
  func.func @transform_3(%arg0: i32) -> (i32, i32) {
    %c0_i32 = arith.constant 0 : i32
    %c0_i32_0 = arith.constant 0 : i32
    %c0_i32_1 = arith.constant 0 : i32
    return %c0_i32, %c0_i32_0 : i32, i32
  }
  func.func @transform_4(%arg0: i32) -> (i32, i32) {
    %c0_i32 = arith.constant 0 : i32
    %c0_i32_0 = arith.constant 0 : i32
    %c0_i32_1 = arith.constant 0 : i32
    return %c0_i32, %c0_i32_0 : i32, i32
  }
  func.func @transform_5(%arg0: i32) -> (i32, i32) {
    %c0_i32 = arith.constant 0 : i32
    %c0_i32_0 = arith.constant 0 : i32
    return %c0_i32, %arg0 : i32, i32
  }
}

</mosaic_0001>

<bundles_post_ra>
// kernel: cvae_forward.9
= control target key start
LH: loop header
LB: loop body
LE: loop exit
PB: predicated region body
PF: predicated region fallthrough
CT: control target
= control target key end

     0   :  { %s431_s12 = smov 0   ;;  %s433_s13 = smov 0   ;;  %s489_s0 = inlined_call_operand.vmem [shape: f32[48,512], index: 0, kind: input, shape index: {}]   ;;  %s490_s1 = inlined_call_operand.vmem [shape: f32[8,48], index: 1, kind: input, shape index: {}]   ;;  %s491_s2 = inlined_call_operand.vmem [shape: f32[8,1], index: 2, kind: input, shape index: {}]   ;;  %s492_s3 = inlined_call_operand.vmem [shape: f32[8,512], index: 3, kind: output, shape index: {}]  }
   0x1   :  { %s435_s14 = smov 0  }
   0x2 LB: > { %s344_s15 = sadd.s32 4294967295, %s408_s14   ;;  %s448_s16 = sadd.s32 1, %s408_s14   ;;  %s408_s14 = sphi %s435_s14, %s495_s14   ;;  %s404_s13 = sphi %s433_s13, %s494_s13   ;;  %s400_s12 = sphi %s431_s12, %s493_s12  }
   0x3   : > { %s17_s17 = ssub.s32 %s408_s14, %s448_s16  ;;  %s20_s18 = sadd.s32 1, %s404_s13 }
   0x4   : > { %p18_p0 = scmp.eq.s32.totalorder %s17_s17, 0  ;;  %p27_p1 = scmp.ne.s32.totalorder %s404_s13, %s400_s12 }
   0x5   : > { %p28_p2 = scmp.eq.s32.totalorder %s408_s14, 0  ;;  %p347_p4 = scmp.ge.s32.totalorder %s408_s14, 2 }
   0x6   : > { %s457_s19 = scalar_select %p18_p0, %s404_s13, %s20_s18  }
   0x7   : > { %p29_p3 = por %p28_p2, %p27_p1  ;;  %127 = sbr.rel (%p347_p4) target bundleno = 28 (0x1c), region = 24 }
   0xc   : > { %130 = sbr.rel (!%p29_p3) target bundleno = 28 (0x1c), region = 28  ;;  %s132_s20 = sand.u32 (%p29_p3), 1, %s404_s13  }
   0xd   : > { %s357_s21 = sshll.u32 (%p29_p3), %s408_s14, 4  ;;  %s358_s22 = smul.u32 (%p29_p3), 96, %s132_s20 }
   0xe   : > { %s137_s25 = scalar_lea.vmem (%p29_p3), %s489_s0, %s357_s21 }
   0xf   : > { %v150_v0 = vld [vmem:[%s137_s25] sm:$0xff] (%p29_p3)  ;;  %v152_v1 = vld [vmem:[%s137_s25 + $0x8] sm:$0xff] (%p29_p3)  ;;  %s134_s26 = scalar_lea.vmem (%p29_p3), [#allocation2], %s358_s22 }
  0x10   : > { %v154_v2 = vld [vmem:[%s137_s25 + $0x20] sm:$0xff] (%p29_p3)  ;;  %151 = vst [vmem:[%s134_s26] sm:$0xff] (%p29_p3), %v150_v0  ;;  %v156_v3 = vld [vmem:[%s137_s25 + $0x28] sm:$0xff] (%p29_p3) }
  0x11   : > { %153 = vst [vmem:[%s134_s26 + $0x8] sm:$0xff] %v152_v1  ;;  %v158_v4 = vld [vmem:[%s137_s25 + $0x40] sm:$0xff]  ;;  %v160_v5 = vld [vmem:[%s137_s25 + $0x48] sm:$0xff] }
  0x12   : > { %155 = vst [vmem:[%s134_s26 + $0x10] sm:$0xff] %v154_v2  ;;  %v162_v6 = vld [vmem:[%s137_s25 + $0x60] sm:$0xff]  ;;  %v164_v7 = vld [vmem:[%s137_s25 + $0x68] sm:$0xff] }
  0x13   : > { %157 = vst [vmem:[%s134_s26 + $0x18] sm:$0xff] %v156_v3  ;;  %v166_v8 = vld [vmem:[%s137_s25 + $0x80] sm:$0xff]  ;;  %v168_v9 = vld [vmem:[%s137_s25 + $0x88] sm:$0xff] }
  0x14   : > { %159 = vst [vmem:[%s134_s26 + $0x20] sm:$0xff] %v158_v4  ;;  %v170_v10 = vld [vmem:[%s137_s25 + $0xa0] sm:$0xff]  ;;  %v172_v11 = vld [vmem:[%s137_s25 + $0xa8] sm:$0xff] }
  0x15   : > { %161 = vst [vmem:[%s134_s26 + $0x28] sm:$0xff] %v160_v5 }
  0x16   : > { %163 = vst [vmem:[%s134_s26 + $0x30] sm:$0xff] %v162_v6 }
  0x17   : > { %165 = vst [vmem:[%s134_s26 + $0x38] sm:$0xff] %v164_v7 }
  0x18   : > { %167 = vst [vmem:[%s134_s26 + $0x40] sm:$0xff] %v166_v8 }
  0x19   : > { %169 = vst [vmem:[%s134_s26 + $0x48] sm:$0xff] %v168_v9 }
  0x1a   : > { %171 = vst [vmem:[%s134_s26 + $0x50] sm:$0xff] %v170_v10 }
  0x1b   : > { %173 = vst [vmem:[%s134_s26 + $0x58] sm:$0xff] %v172_v11 }
  0x1c PF: > { %p350_p5 = scmp.ge.s32.totalorder %s408_s14, 1  ;;  %p178_p6 = scmp.lt.s32.totalorder %s408_s14, 3 }
  0x1e   : > { %p179_p7 = pnand %p350_p5, %p178_p6 }
  0x1f   : > { %s185_s27 = sand.u32 (!%p179_p7), 1, %s400_s12   ;;  %s351_s7 = sshll.u32 (!%p179_p7), %s344_s15, 1 }
  0x20   : > { %182 = sbr.rel (%p179_p7) target bundleno = 181 (0xb5), region = 51  ;;  %p210_p8 = scmp.lt.s32.totalorder (!%p179_p7), %s351_s7, 3 }
  0x21   : > { %s359_s30 = smul.u32 (!%p179_p7), 96, %s185_s27 }
  0x23   : > { %s187_s4 = scalar_lea.vmem (!%p179_p7), [#allocation2], %s359_s30 }
  0x25   : > { %v228_v12 = vld [vmem:[%s491_s2] sm:$0xff]  ;;  %v410_v13 = vmov 0   ;;  %v226_v14 = vld [vmem:[%s187_s4 + $0x50] sm:$0xff]  ;;  %v227_v15 = vld [vmem:[%s187_s4 + $0x58] sm:$0xff]  ;;  %vm234_vm0 = vcmask 392192   ;;  %s497_s7 = smov (!%p210_p8, %s351_s7), 3 }
  0x26   : > { %385 = vset.pattern.permute.xlu0 %v410_v13  ;;  %v224_v16 = vld [vmem:[%s187_s4 + $0x40] sm:$0xff]  ;;  %248 = vmatpush.msra.mxu0 %v226_v14  ;;  %v225_v17 = vld [vmem:[%s187_s4 + $0x48] sm:$0xff]  ;;  %v222_v18 = vld [vmem:[%s187_s4 + $0x30] sm:$0xff]  ;;  %s352_s8 = sshll.u32 %s497_s7, 3 }
  0x27   : > { %231 = vperm.xlu0 %385, %v228_v12   ;;  %268 = vmatpush.msra.mxu1 %v227_v15  ;;  %v223_v19 = vld [vmem:[%s187_s4 + $0x38] sm:$0xff]  ;;  %v220_v20 = vld [vmem:[%s187_s4 + $0x20] sm:$0xff]  ;;  %v221_v21 = vld [vmem:[%s187_s4 + $0x28] sm:$0xff]  ;;  %s213_s11 = scalar_lea.vmem %s492_s3, %s352_s8 }
  0x28   : > { %249 = vmatpush.msra.mxu0 %v224_v16  ;;  %v218_v22 = vld [vmem:[%s187_s4 + $0x10] sm:$0xff]  ;;  %v219_v23 = vld [vmem:[%s187_s4 + $0x18] sm:$0xff]  ;;  %v216_v24 = vld [vmem:[%s187_s4] sm:$0xff] }
  0x29   : > { %269 = vmatpush.msra.mxu1 %v225_v17  ;;  %v217_v25 = vld [vmem:[%s187_s4 + $0x8] sm:$0xff]  ;;  %v215_v26 = vld [vmem:[%s490_s1] sm:$0xff] }
  0x2a   : > { %250 = vmatpush.msra.mxu0 %v222_v18 }
  0x2b   : > { %270 = vmatpush.msra.mxu1 %v223_v19 }
  0x2c   : > { %251 = vmatpush.msra.mxu0 %v220_v20 }
  0x2d   : > { %271 = vmatpush.msra.mxu1 %v221_v21 }
  0x2e   : > { %252 = vmatpush.msra.mxu0 %v218_v22 }
  0x2f   : > { %272 = vmatpush.msra.mxu1 %v219_v23 }
  0x30   : > { %253 = vmatpush.msra.mxu0 %v216_v24 }
  0x31   : > { %273 = vmatpush.msra.mxu1 %v217_v25  ;;  %353 = vmatmul.msk.f32.vlgmr.msra.gmra.mxu0 %vm234_vm0, %v215_v26 }
  0x32   : > { %354 = vmatmul.msk.f32.vlgmr.msra.gmra.mxu1 %vm234_vm0, %v215_v26 }
  0x99   : > { %v232_v27 = vpop.permute.xlu0 %231 }
  0xae   : > { %v255_v28 = vpop.f32.mrf.mxu0 }
  0xaf   : > { %v275_v29 = vpop.f32.mrf.mxu1  ;;  %v256_v30 = vadd.f32 %v255_v28, %v232_v27 }
  0xb0   : > { %v276_v31 = vadd.f32 %v275_v29, %v232_v27 }
  0xb1   : > { %v278_v32 = vmax.f32 %v256_v30, 0.0 }
  0xb2   : > { %v279_v33 = vmax.f32 %v276_v31, 0.0 }
  0xb3   : > { %280 = vst [vmem:[%s213_s11] sm:$0xff] %v278_v32 }
  0xb4   : > { %281 = vst [vmem:[%s213_s11 + $0x8] sm:$0xff] %v279_v33 }
  0xb5 PF: > { %p10_p9 = scmp.ge.s32.totalorder %s448_s16, 4   ;;  %s493_s12 = smov %s404_s13 }
  0xb6   : > { %s494_s13 = smov %s457_s19  ;;  %s495_s14 = smov %s448_s16 }
  0xb7   :  { %12 = sbr.rel (!%p10_p9) target bundleno = 2 (0x2), region = 90 }

// kernel: cvae_forward.10
= control target key start
LH: loop header
LB: loop body
LE: loop exit
PB: predicated region body
PF: predicated region fallthrough
CT: control target
= control target key end

     0   :  { %v93_v2 = vmov 0   ;;  %s180_s0 = inlined_call_operand.vmem [shape: f32[128,128], index: 0, kind: input, shape index: {}]   ;;  %s181_s2 = inlined_call_operand.vmem [shape: f32[16,1], index: 2, kind: input, shape index: {}]   ;;  %s182_s1 = inlined_call_operand.vmem [shape: f32[16,128], index: 1, kind: input, shape index: {}]   ;;  %s183_s3 = inlined_call_operand.vmem [shape: f32[16,128], index: 3, kind: output, shape index: {}]  }
   0x1   :  { %v31_v0 = vld [vmem:[%s180_s0 + $0x78] sm:$0xff]  ;;  %v30_v1 = vld [vmem:[%s180_s0 + $0x70] sm:$0xff]  ;;  %92 = vset.pattern.permute.xlu0 %v93_v2  ;;  %v29_v3 = vld [vmem:[%s180_s0 + $0x68] sm:$0xff] }
   0x2   :  { %44 = vmatpush.msra.mxu0 %v31_v0  ;;  %75 = vmatpush.msra.mxu1 %v31_v0  ;;  %v28_v4 = vld [vmem:[%s180_s0 + $0x60] sm:$0xff]  ;;  %v27_v6 = vld [vmem:[%s180_s0 + $0x58] sm:$0xff]  ;;  %v26_v7 = vld [vmem:[%s180_s0 + $0x50] sm:$0xff] }
   0x3   :  { %v32_v5 = vld [vmem:[%s181_s2] sm:$0xff]  ;;  %v25_v8 = vld [vmem:[%s180_s0 + $0x48] sm:$0xff]  ;;  %v23_v11 = vld [vmem:[%s180_s0 + $0x38] sm:$0xff] }
   0x4   :  { %45 = vmatpush.msra.mxu0 %v30_v1  ;;  %76 = vmatpush.msra.mxu1 %v30_v1  ;;  %v33_v9 = vld [vmem:[%s181_s2 + $0x8] sm:$0xff]  ;;  %v24_v10 = vld [vmem:[%s180_s0 + $0x40] sm:$0xff]  ;;  %v22_v12 = vld [vmem:[%s180_s0 + $0x30] sm:$0xff] }
   0x5   :  { %36 = vperm.xlu0 %92, %v32_v5   ;;  %v21_v13 = vld [vmem:[%s180_s0 + $0x28] sm:$0xff]  ;;  %v20_v14 = vld [vmem:[%s180_s0 + $0x20] sm:$0xff]  ;;  %v19_v15 = vld [vmem:[%s180_s0 + $0x18] sm:$0xff] }
   0x6   :  { %46 = vmatpush.msra.mxu0 %v29_v3  ;;  %77 = vmatpush.msra.mxu1 %v29_v3  ;;  %v18_v16 = vld [vmem:[%s180_s0 + $0x10] sm:$0xff]  ;;  %v17_v17 = vld [vmem:[%s180_s0 + $0x8] sm:$0xff]  ;;  %v16_v18 = vld [vmem:[%s180_s0] sm:$0xff] }
   0x7   :  { %v14_v19 = vld [vmem:[%s182_s1] sm:$0xff]  ;;  %v15_v20 = vld [vmem:[%s182_s1 + $0x8] sm:$0xff] }
   0x8   :  { %47 = vmatpush.msra.mxu0 %v28_v4  ;;  %78 = vmatpush.msra.mxu1 %v28_v4 }
   0xa   :  { %48 = vmatpush.msra.mxu0 %v27_v6  ;;  %79 = vmatpush.msra.mxu1 %v27_v6 }
   0xc   :  { %49 = vmatpush.msra.mxu0 %v26_v7  ;;  %80 = vmatpush.msra.mxu1 %v26_v7 }
   0xd   :  { %41 = vperm.xlu0 %92, %v33_v9  }
   0xe   :  { %50 = vmatpush.msra.mxu0 %v25_v8  ;;  %81 = vmatpush.msra.mxu1 %v25_v8 }
  0x10   :  { %51 = vmatpush.msra.mxu0 %v24_v10  ;;  %82 = vmatpush.msra.mxu1 %v24_v10 }
  0x12   :  { %52 = vmatpush.msra.mxu0 %v23_v11  ;;  %83 = vmatpush.msra.mxu1 %v23_v11 }
  0x14   :  { %53 = vmatpush.msra.mxu0 %v22_v12  ;;  %84 = vmatpush.msra.mxu1 %v22_v12 }
  0x16   :  { %54 = vmatpush.msra.mxu0 %v21_v13  ;;  %85 = vmatpush.msra.mxu1 %v21_v13 }
  0x18   :  { %55 = vmatpush.msra.mxu0 %v20_v14  ;;  %86 = vmatpush.msra.mxu1 %v20_v14 }
  0x1a   :  { %56 = vmatpush.msra.mxu0 %v19_v15  ;;  %87 = vmatpush.msra.mxu1 %v19_v15 }
  0x1c   :  { %57 = vmatpush.msra.mxu0 %v18_v16  ;;  %88 = vmatpush.msra.mxu1 %v18_v16 }
  0x1e   :  { %58 = vmatpush.msra.mxu0 %v17_v17  ;;  %89 = vmatpush.msra.mxu1 %v17_v17 }
  0x20   :  { %59 = vmatpush.msra.mxu0 %v16_v18  ;;  %90 = vmatpush.msra.mxu1 %v16_v18 }
  0x21   :  { %60 = vmatmul.f32.vlgmr.msra.gmra.mxu0 %v14_v19  ;;  %63 = vmatmul.f32.vlgmr.msra.gmra.mxu1 %v15_v20 }
  0x77   :  { %v37_v21 = vpop.permute.xlu0 %36 }
  0x7f   :  { %v42_v22 = vpop.permute.xlu0 %41 }
  0x9e   :  { %v61_v23 = vpop.f32.mrf.mxu0  ;;  %v64_v24 = vpop.f32.mrf.mxu1 }
  0x9f   :  { %v62_v25 = vadd.f32 %v61_v23, %v37_v21  ;;  %v65_v26 = vadd.f32 %v64_v24, %v42_v22 }
  0xa1   :  { %v67_v27 = vmax.f32 %v62_v25, 0.0  ;;  %v68_v28 = vmax.f32 %v65_v26, 0.0 }
  0xa3   :  { %69 = vst [vmem:[%s183_s3] sm:$0xff] %v67_v27 }
  0xa4   :  { %70 = vst [vmem:[%s183_s3 + $0x8] sm:$0xff] %v68_v28 }

// kernel: cvae_forward.11
= control target key start
LH: loop header
LB: loop body
LE: loop exit
PB: predicated region body
PF: predicated region fallthrough
CT: control target
= control target key end

     0   :  { %v281_v3 = vmov 0   ;;  %vm117_vm12 = vcmask 130048   ;;  %s440_s0 = inlined_call_operand.vmem [shape: f32[144,128], index: 0, kind: input, shape index: {}]   ;;  %s441_s3 = inlined_call_operand.vmem [shape: f32[16,1], index: 3, kind: input, shape index: {}]   ;;  %s442_s2 = inlined_call_operand.vmem [shape: f32[16,144], index: 2, kind: input, shape index: {}]   ;;  %s443_s7 = inlined_call_operand.vmem [shape: f32[16,1], index: 7, kind: input, shape index: {}]   ;;  %s444_s5 = inlined_call_operand.vmem [shape: f32[16,1], index: 5, kind: input, shape index: {}]   ;;  %s445_s6 = inlined_call_operand.vmem [shape: f32[16,1], index: 6, kind: input, shape index: {}]   ;;  %s446_s4 = inlined_call_operand.vmem [shape: f32[16,16], index: 4, kind: input, shape index: {}]   ;;  %s447_s1 = inlined_call_operand.vmem [shape: f32[16,128], index: 1, kind: input, shape index: {}]   ;;  %s448_s8 = inlined_call_operand.vmem [shape: f32[16,128], index: 8, kind: output, shape index: {}]  }
   0x1   :  { %v48_v0 = vld [vmem:[%s440_s0 + $0x78] sm:$0xff]  ;;  %v47_v1 = vld [vmem:[%s440_s0 + $0x70] sm:$0xff]  ;;  %v46_v2 = vld [vmem:[%s440_s0 + $0x68] sm:$0xff]  ;;  %278 = vset.pattern.permute.xlu0 %v281_v3  ;;  %279 = vset.pattern.permute.xlu1 %v281_v3 }
   0x2   :  { %vm66_vm0 = vcmp.ge.f32.partialorder %v48_v0, 0.0  ;;  %v84_v4 = vmul.f32 0.01, %v48_v0  ;;  %vm65_vm1 = vcmp.ge.f32.partialorder %v47_v1, 0.0  ;;  %v83_v5 = vmul.f32 0.01, %v47_v1  ;;  %280 = vset.pattern.permute.xlu2 %v281_v3 }
   0x3   :  { %vm64_vm2 = vcmp.ge.f32.partialorder %v46_v2, 0.0  ;;  %v82_v6 = vmul.f32 0.01, %v46_v2  ;;  %v45_v7 = vld [vmem:[%s440_s0 + $0x60] sm:$0xff]  ;;  %v44_v8 = vld [vmem:[%s440_s0 + $0x58] sm:$0xff]  ;;  %v43_v12 = vld [vmem:[%s440_s0 + $0x50] sm:$0xff] }
   0x4   :  { %v102_v9 = vsel %vm66_vm0, %v48_v0, %v84_v4  ;;  %v101_v10 = vsel %vm65_vm1, %v47_v1, %v83_v5  ;;  %v81_v11 = vmul.f32 0.01, %v45_v7  ;;  %vm63_vm3 = vcmp.ge.f32.partialorder %v45_v7, 0.0  ;;  %v42_v15 = vld [vmem:[%s440_s0 + $0x48] sm:$0xff]  ;;  %v41_v19 = vld [vmem:[%s440_s0 + $0x40] sm:$0xff]  ;;  %v40_v23 = vld [vmem:[%s440_s0 + $0x38] sm:$0xff] }
   0x5   :  { %124 = vmatpush.msra.mxu0 %v102_v9  ;;  %261 = vmatpush.msra.mxu3 %v102_v9  ;;  %v100_v13 = vsel %vm64_vm2, %v46_v2, %v82_v6  ;;  %v80_v14 = vmul.f32 0.01, %v44_v8  ;;  %vm62_vm4 = vcmp.ge.f32.partialorder %v44_v8, 0.0  ;;  %v106_v16 = vld [vmem:[%s441_s3 + $0x8] sm:$0xff]  ;;  %v79_v18 = vmul.f32 0.01, %v43_v12 }
   0x6   :  { %v99_v17 = vsel %vm63_vm3, %v45_v7, %v81_v11  ;;  %114 = vperm.xlu0 %278, %v106_v16   ;;  %vm61_vm5 = vcmp.ge.f32.partialorder %v43_v12, 0.0  ;;  %v78_v21 = vmul.f32 0.01, %v42_v15  ;;  %v50_v22 = vld [vmem:[%s440_s0 + $0x88] sm:$0xff]  ;;  %vm60_vm6 = vcmp.ge.f32.partialorder %v42_v15, 0.0  ;;  %v49_v24 = vld [vmem:[%s440_s0 + $0x80] sm:$0xff] }
   0x7   :  { %125 = vmatpush.msra.mxu0 %v101_v10  ;;  %262 = vmatpush.msra.mxu3 %v101_v10  ;;  %v98_v20 = vsel %vm62_vm4, %v44_v8, %v80_v14  ;;  %v97_v25 = vsel %vm61_vm5, %v43_v12, %v79_v18  ;;  %v77_v26 = vmul.f32 0.01, %v41_v19  ;;  %vm59_vm7 = vcmp.ge.f32.partialorder %v41_v19, 0.0  ;;  %v39_v27 = vld [vmem:[%s440_s0 + $0x30] sm:$0xff]  ;;  %v105_v29 = vld [vmem:[%s441_s3] sm:$0xff]  ;;  %v38_v32 = vld [vmem:[%s440_s0 + $0x28] sm:$0xff] }
   0x8   :  { %vm68_vm8 = vcmp.ge.f32.partialorder %v50_v22, 0.0  ;;  %v86_v28 = vmul.f32 0.01, %v50_v22  ;;  %v96_v30 = vsel %vm60_vm6, %v42_v15, %v78_v21  ;;  %v76_v31 = vmul.f32 0.01, %v40_v23  ;;  %v37_v37 = vld [vmem:[%s440_s0 + $0x20] sm:$0xff] }
   0x9   :  { %126 = vmatpush.msra.mxu0 %v100_v13  ;;  %263 = vmatpush.msra.mxu3 %v100_v13  ;;  %vm67_vm9 = vcmp.ge.f32.partialorder %v49_v24, 0.0  ;;  %vm58_vm10 = vcmp.ge.f32.partialorder %v40_v23, 0.0  ;;  %v85_v34 = vmul.f32 0.01, %v49_v24  ;;  %v95_v35 = vsel %vm59_vm7, %v41_v19, %v77_v26  ;;  %v30_v39 = vld [vmem:[%s442_s2 + $0x8] sm:$0xff]  ;;  %v36_v42 = vld [vmem:[%s440_s0 + $0x18] sm:$0xff] }
   0xa   :  { %v104_v33 = vsel %vm68_vm8, %v50_v22, %v86_v28  ;;  %v75_v36 = vmul.f32 0.01, %v39_v27  ;;  %vm57_vm11 = vcmp.ge.f32.partialorder %v39_v27, 0.0  ;;  %v94_v40 = vsel %vm58_vm10, %v40_v23, %v76_v31  ;;  %v35_v45 = vld [vmem:[%s440_s0 + $0x10] sm:$0xff]  ;;  %v237_v46 = vld [vmem:[%s443_s7] sm:$0xff]  ;;  %v34_v49 = vld [vmem:[%s440_s0 + $0x8] sm:$0xff] }
   0xb   :  { %127 = vmatpush.msra.mxu0 %v99_v17  ;;  %264 = vmatpush.msra.mxu3 %v99_v17  ;;  %v103_v38 = vsel %vm67_vm9, %v49_v24, %v85_v34  ;;  %v74_v41 = vmul.f32 0.01, %v38_v32  ;;  %vm56_vm13 = vcmp.ge.f32.partialorder %v38_v32, 0.0  ;;  %v73_v44 = vmul.f32 0.01, %v37_v37  ;;  %v33_v52 = vld [vmem:[%s440_s0] sm:$0xff] }
   0xc   :  { %161 = vmatpush.msra.mxu1 %v104_v33  ;;  %v93_v43 = vsel %vm57_vm11, %v39_v27, %v75_v36  ;;  %vm55_vm14 = vcmp.ge.f32.partialorder %v37_v37, 0.0  ;;  %v72_v48 = vmul.f32 0.01, %v36_v42  ;;  %vm54_vm15 = vcmp.ge.f32.partialorder %v36_v42, 0.0  ;;  %v32_v53 = vld [vmem:[%s442_s2 + $0x18] sm:$0xff]  ;;  %v29_v60 = vld [vmem:[%s442_s2] sm:$0xff] }
   0xd   :  { %128 = vmatpush.msra.mxu0 %v98_v20  ;;  %265 = vmatpush.msra.mxu3 %v98_v20  ;;  %v92_v47 = vsel %vm56_vm13, %v38_v32, %v74_v41  ;;  %v91_v50 = vsel %vm55_vm14, %v37_v37, %v73_v44  ;;  %v71_v51 = vmul.f32 0.01, %v35_v45  ;;  %vm53_vm0 = vcmp.ge.f32.partialorder %v35_v45, 0.0  ;;  %v31_v61 = vld [vmem:[%s442_s2 + $0x10] sm:$0xff]  ;;  %v178_v62 = vld [vmem:[%s444_s5] sm:$0xff]  ;;  %v179_v63 = vld [vmem:[%s444_s5 + $0x8] sm:$0xff] }
   0xe   :  { %109 = vperm.xlu0 %278, %v105_v29   ;;  %162 = vmatpush.msra.mxu1 %v103_v38  ;;  %v90_v54 = vsel %vm54_vm15, %v36_v42, %v72_v48  ;;  %v70_v55 = vmul.f32 0.01, %v34_v49  ;;  %vm52_vm1 = vcmp.ge.f32.partialorder %v34_v49, 0.0  ;;  %v69_v57 = vmul.f32 0.01, %v33_v52  ;;  %v223_v1 = vld [vmem:[%s445_s6] sm:$0xff] }
   0xf   :  { %129 = vmatpush.msra.mxu0 %v97_v25  ;;  %266 = vmatpush.msra.mxu3 %v97_v25  ;;  %v89_v56 = vsel %vm53_vm0, %v35_v45, %v71_v51  ;;  %vm51_vm2 = vcmp.ge.f32.partialorder %v33_v52, 0.0  ;;  %v238_v3 = vld [vmem:[%s443_s7 + $0x8] sm:$0xff]  ;;  %v176_v16 = vld [vmem:[%s446_s4] sm:$0xff] }
  0x10   :  { %257 = vmatmul.msk.f32.vlgmr.msra.gmra.mxu1 %vm117_vm12, %v30_v39  ;;  %v88_v58 = vsel %vm52_vm1, %v34_v49, %v70_v55  ;;  %v87_v59 = vsel %vm51_vm2, %v33_v52, %v69_v57  ;;  %182 = vperm.xlu1 %279, %v178_v62   ;;  %v224_v4 = vld [vmem:[%s445_s6 + $0x8] sm:$0xff]  ;;  %v219_v21 = vld [vmem:[%s447_s1] sm:$0xff] }
  0x11   :  { %130 = vmatpush.msra.mxu0 %v96_v30  ;;  %267 = vmatpush.msra.mxu3 %v96_v30  ;;  %v177_v18 = vld [vmem:[%s446_s4 + $0x8] sm:$0xff] }
  0x12   :  { %227 = vperm.xlu2 %280, %v223_v1   ;;  %v220_v30 = vld [vmem:[%s447_s1 + $0x8] sm:$0xff] }
  0x13   :  { %131 = vmatpush.msra.mxu0 %v95_v35  ;;  %268 = vmatpush.msra.mxu3 %v95_v35 }
  0x15   :  { %132 = vmatpush.msra.mxu0 %v94_v40  ;;  %269 = vmatpush.msra.mxu3 %v94_v40 }
  0x16   :  { %241 = vperm.xlu0 %278, %v237_v46  }
  0x17   :  { %133 = vmatpush.msra.mxu0 %v93_v43  ;;  %270 = vmatpush.msra.mxu3 %v93_v43 }
  0x18   :  { %258 = vmatmul.msk.f32.gmra.mxu1 %vm117_vm12, %v32_v53  ;;  %187 = vperm.xlu1 %279, %v179_v63  }
  0x19   :  { %134 = vmatpush.msra.mxu0 %v92_v47  ;;  %271 = vmatpush.msra.mxu3 %v92_v47 }
  0x1a   :  { %232 = vperm.xlu2 %280, %v224_v4  }
  0x1b   :  { %135 = vmatpush.msra.mxu0 %v91_v50  ;;  %272 = vmatpush.msra.mxu3 %v91_v50 }
  0x1d   :  { %136 = vmatpush.msra.mxu0 %v90_v54  ;;  %273 = vmatpush.msra.mxu3 %v90_v54 }
  0x1f   :  { %137 = vmatpush.msra.mxu0 %v89_v56  ;;  %274 = vmatpush.msra.mxu3 %v89_v56 }
  0x20   :  { %246 = vperm.xlu1 %279, %v238_v3  }
  0x21   :  { %138 = vmatpush.msra.mxu0 %v88_v58  ;;  %275 = vmatpush.msra.mxu3 %v88_v58 }
  0x23   :  { %139 = vmatpush.msra.mxu0 %v87_v59  ;;  %276 = vmatpush.msra.mxu3 %v87_v59 }
  0x24   :  { %140 = vmatmul.f32.vlgmr.msra.gmra.mxu0 %v29_v60  ;;  %143 = vmatmul.f32.vlgmr.msra.gmra.mxu3 %v31_v61 }
  0x6c   :  { %v228_v23 = vpop.permute.xlu2 %227 }
  0x74   :  { %v233_v33 = vpop.permute.xlu2 %232 }
  0x78   :  { %v115_v0 = vpop.permute.xlu0 %114 }
  0x80   :  { %v110_v6 = vpop.permute.xlu0 %109 }
  0x82   :  { %v183_v19 = vpop.permute.xlu1 %182 }
  0x88   :  { %v242_v27 = vpop.permute.xlu0 %241 }
  0x8a   :  { %v188_v25 = vpop.permute.xlu1 %187 }
  0x8d   :  { %v164_v2 = vpop.f32.mrf.mxu1 }
  0x92   :  { %v247_v35 = vpop.permute.xlu1 %246 }
  0x95   :  { %v167_v9 = vpop.f32.mrf.mxu1 }
  0xa1   :  { %v141_v5 = vpop.f32.mrf.mxu0 }
  0xa2   :  { %v142_v7 = vadd.f32 %v141_v5, %v110_v6 }
  0xa4   :  { %v165_v10 = vadd.f32 %v164_v2, %v142_v7 }
  0xa6   :  { %v172_v14 = vmul.f32 0.01, %v165_v10  ;;  %vm170_vm4 = vcmp.ge.f32.partialorder %v165_v10, 0.0 }
  0xa7   :  { %v144_v8 = vpop.f32.mrf.mxu3 }
  0xa8   :  { %v145_v11 = vadd.f32 %v144_v8, %v115_v0  ;;  %v174_v17 = vsel %vm170_vm4, %v165_v10, %v172_v14 }
  0xaa   :  { %v168_v12 = vadd.f32 %v167_v9, %v145_v11 }
  0xac   :  { %vm171_vm3 = vcmp.ge.f32.partialorder %v168_v12, 0.0  ;;  %v173_v13 = vmul.f32 0.01, %v168_v12 }
  0xae   :  { %v175_v15 = vsel %vm171_vm3, %v168_v12, %v173_v13 }
  0xaf   :  { %210 = vmatpush.msra.mxu2 %v175_v15 }
  0xb1   :  { %211 = vmatpush.msra.mxu2 %v174_v17 }
  0xb2   :  { %259 = vmatmul.msk.f32.vlgmr.msra.gmra.mxu2 %vm117_vm12, %v176_v16 }
  0xba   :  { %260 = vmatmul.msk.f32.gmra.mxu2 %vm117_vm12, %v177_v18 }
 0x135   :  { %v213_v20 = vpop.f32.mrf.mxu2 }
 0x136   :  { %v214_v22 = vadd.f32 %v213_v20, %v183_v19 }
 0x138   :  { %v221_v24 = vadd.f32 %v219_v21, %v214_v22 }
 0x13a   :  { %v235_v26 = vmul.f32 %v228_v23, %v221_v24 }
 0x13c   :  { %v249_v28 = vadd.f32 %v242_v27, %v235_v26 }
 0x13d   :  { %v216_v29 = vpop.f32.mrf.mxu2 }
 0x13e   :  { %251 = vst [vmem:[%s448_s8] sm:$0xff] %v249_v28  ;;  %v217_v31 = vadd.f32 %v216_v29, %v188_v25 }
 0x140   :  { %v222_v32 = vadd.f32 %v220_v30, %v217_v31 }
 0x142   :  { %v236_v34 = vmul.f32 %v233_v33, %v222_v32 }
 0x144   :  { %v250_v36 = vadd.f32 %v247_v35, %v236_v34 }
 0x146   :  { %252 = vst [vmem:[%s448_s8 + $0x8] sm:$0xff] %v250_v36 }

// kernel: cvae_forward.13
= control target key start
LH: loop header
LB: loop body
LE: loop exit
PB: predicated region body
PF: predicated region fallthrough
CT: control target
= control target key end

     0   :  { %vm369_vm0 = vcmask 130048   ;;  %vm547_vm1 = vcmask 1041408   ;;  %vm549_vm2 = vcmask 1045508   ;;  %vm551_vm3 = vcmask 1043456   ;;  %s1059_s1 = inlined_call_operand.vmem [shape: f32[1024,16], index: 1, kind: input, shape index: {}]   ;;  %s1060_s0 = inlined_call_operand.vmem [shape: f32[2,1024], index: 0, kind: input, shape index: {}]   ;;  %s1061_s2 = inlined_call_operand.vmem [shape: f32[1,16], index: 2, kind: input, shape index: {}]   ;;  %s1062_s3 = inlined_call_operand.vmem [shape: f32[16,1024], index: 3, kind: input, shape index: {}]   ;;  %s1063_s4 = inlined_call_operand.vmem [shape: f32[1,1024], index: 4, kind: input, shape index: {}]   ;;  %s1064_s5 = inlined_call_operand.vmem [shape: f32[2,1024], index: 5, kind: output, shape index: {}]  }
   0x1   :  { %v69_v0 = vld [vmem:[%s1059_s1 + $0x178] sm:$0xff]  ;;  %v68_v2 = vld [vmem:[%s1059_s1 + $0x170] sm:$0xff]  ;;  %v67_v6 = vld [vmem:[%s1059_s1 + $0x168] sm:$0xff] }
   0x2   :  { %v37_v1 = vld [vmem:[%s1059_s1 + $0x78] sm:$0xff]  ;;  %215 = vmatpush.msra.mxu2 %v69_v0  ;;  %v36_v4 = vld [vmem:[%s1059_s1 + $0x70] sm:$0xff]  ;;  %v35_v8 = vld [vmem:[%s1059_s1 + $0x68] sm:$0xff] }
   0x3   :  { %175 = vmatpush.msra.mxu0 %v37_v1  ;;  %v85_v3 = vld [vmem:[%s1059_s1 + $0x1f8] sm:$0xff]  ;;  %v84_v7 = vld [vmem:[%s1059_s1 + $0x1f0] sm:$0xff]  ;;  %v83_v10 = vld [vmem:[%s1059_s1 + $0x1e8] sm:$0xff] }
   0x4   :  { %v53_v5 = vld [vmem:[%s1059_s1 + $0xf8] sm:$0xff]  ;;  %235 = vmatpush.msra.mxu3 %v85_v3  ;;  %216 = vmatpush.msra.mxu2 %v68_v2  ;;  %v52_v9 = vld [vmem:[%s1059_s1 + $0xf0] sm:$0xff]  ;;  %v66_v11 = vld [vmem:[%s1059_s1 + $0x160] sm:$0xff] }
   0x5   :  { %195 = vmatpush.msra.mxu1 %v53_v5  ;;  %176 = vmatpush.msra.mxu0 %v36_v4  ;;  %v34_v12 = vld [vmem:[%s1059_s1 + $0x60] sm:$0xff]  ;;  %v51_v13 = vld [vmem:[%s1059_s1 + $0xe8] sm:$0xff]  ;;  %v65_v16 = vld [vmem:[%s1059_s1 + $0x158] sm:$0xff] }
   0x6   :  { %236 = vmatpush.msra.mxu3 %v84_v7  ;;  %217 = vmatpush.msra.mxu2 %v67_v6  ;;  %v82_v14 = vld [vmem:[%s1059_s1 + $0x1e0] sm:$0xff]  ;;  %v33_v17 = vld [vmem:[%s1059_s1 + $0x58] sm:$0xff]  ;;  %v64_v20 = vld [vmem:[%s1059_s1 + $0x150] sm:$0xff] }
   0x7   :  { %196 = vmatpush.msra.mxu1 %v52_v9  ;;  %177 = vmatpush.msra.mxu0 %v35_v8  ;;  %v50_v15 = vld [vmem:[%s1059_s1 + $0xe0] sm:$0xff]  ;;  %v81_v18 = vld [vmem:[%s1059_s1 + $0x1d8] sm:$0xff]  ;;  %v32_v21 = vld [vmem:[%s1059_s1 + $0x50] sm:$0xff] }
   0x8   :  { %237 = vmatpush.msra.mxu3 %v83_v10  ;;  %218 = vmatpush.msra.mxu2 %v66_v11  ;;  %v49_v19 = vld [vmem:[%s1059_s1 + $0xd8] sm:$0xff]  ;;  %v80_v22 = vld [vmem:[%s1059_s1 + $0x1d0] sm:$0xff]  ;;  %v63_v24 = vld [vmem:[%s1059_s1 + $0x148] sm:$0xff] }
   0x9   :  { %197 = vmatpush.msra.mxu1 %v51_v13  ;;  %178 = vmatpush.msra.mxu0 %v34_v12  ;;  %v48_v23 = vld [vmem:[%s1059_s1 + $0xd0] sm:$0xff]  ;;  %v31_v25 = vld [vmem:[%s1059_s1 + $0x48] sm:$0xff]  ;;  %v62_v28 = vld [vmem:[%s1059_s1 + $0x140] sm:$0xff] }
   0xa   :  { %238 = vmatpush.msra.mxu3 %v82_v14  ;;  %219 = vmatpush.msra.mxu2 %v65_v16  ;;  %v79_v26 = vld [vmem:[%s1059_s1 + $0x1c8] sm:$0xff]  ;;  %v30_v29 = vld [vmem:[%s1059_s1 + $0x40] sm:$0xff]  ;;  %v61_v32 = vld [vmem:[%s1059_s1 + $0x138] sm:$0xff] }
   0xb   :  { %198 = vmatpush.msra.mxu1 %v50_v15  ;;  %179 = vmatpush.msra.mxu0 %v33_v17  ;;  %v47_v27 = vld [vmem:[%s1059_s1 + $0xc8] sm:$0xff]  ;;  %v78_v30 = vld [vmem:[%s1059_s1 + $0x1c0] sm:$0xff]  ;;  %v29_v33 = vld [vmem:[%s1059_s1 + $0x38] sm:$0xff] }
   0xc   :  { %239 = vmatpush.msra.mxu3 %v81_v18  ;;  %220 = vmatpush.msra.mxu2 %v64_v20  ;;  %v46_v31 = vld [vmem:[%s1059_s1 + $0xc0] sm:$0xff]  ;;  %v77_v34 = vld [vmem:[%s1059_s1 + $0x1b8] sm:$0xff]  ;;  %v60_v36 = vld [vmem:[%s1059_s1 + $0x130] sm:$0xff] }
   0xd   :  { %199 = vmatpush.msra.mxu1 %v49_v19  ;;  %180 = vmatpush.msra.mxu0 %v32_v21  ;;  %v45_v35 = vld [vmem:[%s1059_s1 + $0xb8] sm:$0xff]  ;;  %v28_v37 = vld [vmem:[%s1059_s1 + $0x30] sm:$0xff]  ;;  %v59_v40 = vld [vmem:[%s1059_s1 + $0x128] sm:$0xff] }
   0xe   :  { %240 = vmatpush.msra.mxu3 %v80_v22  ;;  %221 = vmatpush.msra.mxu2 %v63_v24  ;;  %v76_v38 = vld [vmem:[%s1059_s1 + $0x1b0] sm:$0xff]  ;;  %v27_v41 = vld [vmem:[%s1059_s1 + $0x28] sm:$0xff]  ;;  %v58_v44 = vld [vmem:[%s1059_s1 + $0x120] sm:$0xff] }
   0xf   :  { %200 = vmatpush.msra.mxu1 %v48_v23  ;;  %181 = vmatpush.msra.mxu0 %v31_v25  ;;  %v44_v39 = vld [vmem:[%s1059_s1 + $0xb0] sm:$0xff]  ;;  %v75_v42 = vld [vmem:[%s1059_s1 + $0x1a8] sm:$0xff]  ;;  %v26_v45 = vld [vmem:[%s1059_s1 + $0x20] sm:$0xff] }
  0x10   :  { %241 = vmatpush.msra.mxu3 %v79_v26  ;;  %222 = vmatpush.msra.mxu2 %v62_v28  ;;  %v43_v43 = vld [vmem:[%s1059_s1 + $0xa8] sm:$0xff]  ;;  %v74_v46 = vld [vmem:[%s1059_s1 + $0x1a0] sm:$0xff]  ;;  %v57_v48 = vld [vmem:[%s1059_s1 + $0x118] sm:$0xff] }
  0x11   :  { %201 = vmatpush.msra.mxu1 %v47_v27  ;;  %182 = vmatpush.msra.mxu0 %v30_v29  ;;  %v42_v47 = vld [vmem:[%s1059_s1 + $0xa0] sm:$0xff]  ;;  %v25_v49 = vld [vmem:[%s1059_s1 + $0x18] sm:$0xff]  ;;  %v56_v52 = vld [vmem:[%s1059_s1 + $0x110] sm:$0xff] }
  0x12   :  { %242 = vmatpush.msra.mxu3 %v78_v30  ;;  %223 = vmatpush.msra.mxu2 %v61_v32  ;;  %v73_v50 = vld [vmem:[%s1059_s1 + $0x198] sm:$0xff]  ;;  %v24_v53 = vld [vmem:[%s1059_s1 + $0x10] sm:$0xff]  ;;  %v55_v56 = vld [vmem:[%s1059_s1 + $0x108] sm:$0xff] }
  0x13   :  { %202 = vmatpush.msra.mxu1 %v46_v31  ;;  %183 = vmatpush.msra.mxu0 %v29_v33  ;;  %v41_v51 = vld [vmem:[%s1059_s1 + $0x98] sm:$0xff]  ;;  %v72_v54 = vld [vmem:[%s1059_s1 + $0x190] sm:$0xff]  ;;  %v23_v57 = vld [vmem:[%s1059_s1 + $0x8] sm:$0xff] }
  0x14   :  { %243 = vmatpush.msra.mxu3 %v77_v34  ;;  %224 = vmatpush.msra.mxu2 %v60_v36  ;;  %v40_v55 = vld [vmem:[%s1059_s1 + $0x90] sm:$0xff]  ;;  %v71_v58 = vld [vmem:[%s1059_s1 + $0x188] sm:$0xff]  ;;  %v54_v60 = vld [vmem:[%s1059_s1 + $0x100] sm:$0xff] }
  0x15   :  { %203 = vmatpush.msra.mxu1 %v45_v35  ;;  %184 = vmatpush.msra.mxu0 %v28_v37  ;;  %v39_v59 = vld [vmem:[%s1059_s1 + $0x88] sm:$0xff]  ;;  %v22_v61 = vld [vmem:[%s1059_s1] sm:$0xff]  ;;  %v133_v62 = vld [vmem:[%s1059_s1 + $0x378] sm:$0xff] }
  0x16   :  { %244 = vmatpush.msra.mxu3 %v76_v38  ;;  %225 = vmatpush.msra.mxu2 %v59_v40  ;;  %v70_v63 = vld [vmem:[%s1059_s1 + $0x180] sm:$0xff]  ;;  %v101_v0 = vld [vmem:[%s1059_s1 + $0x278] sm:$0xff]  ;;  %v132_v2 = vld [vmem:[%s1059_s1 + $0x370] sm:$0xff] }
  0x17   :  { %204 = vmatpush.msra.mxu1 %v44_v39  ;;  %185 = vmatpush.msra.mxu0 %v27_v41  ;;  %v149_v1 = vld [vmem:[%s1059_s1 + $0x3f8] sm:$0xff]  ;;  %v38_v3 = vld [vmem:[%s1059_s1 + $0x80] sm:$0xff]  ;;  %v100_v4 = vld [vmem:[%s1059_s1 + $0x270] sm:$0xff] }
  0x18   :  { %245 = vmatpush.msra.mxu3 %v75_v42  ;;  %226 = vmatpush.msra.mxu2 %v58_v44  ;;  %v117_v5 = vld [vmem:[%s1059_s1 + $0x2f8] sm:$0xff]  ;;  %v131_v6 = vld [vmem:[%s1059_s1 + $0x368] sm:$0xff]  ;;  %v148_v7 = vld [vmem:[%s1059_s1 + $0x3f0] sm:$0xff] }
  0x19   :  { %205 = vmatpush.msra.mxu1 %v43_v43  ;;  %186 = vmatpush.msra.mxu0 %v26_v45  ;;  %v99_v8 = vld [vmem:[%s1059_s1 + $0x268] sm:$0xff]  ;;  %v116_v9 = vld [vmem:[%s1059_s1 + $0x2f0] sm:$0xff]  ;;  %v130_v10 = vld [vmem:[%s1059_s1 + $0x360] sm:$0xff] }
  0x1a   :  { %246 = vmatpush.msra.mxu3 %v74_v46  ;;  %227 = vmatpush.msra.mxu2 %v57_v48  ;;  %v147_v11 = vld [vmem:[%s1059_s1 + $0x3e8] sm:$0xff]  ;;  %v98_v12 = vld [vmem:[%s1059_s1 + $0x260] sm:$0xff]  ;;  %v129_v15 = vld [vmem:[%s1059_s1 + $0x358] sm:$0xff] }
  0x1b   :  { %206 = vmatpush.msra.mxu1 %v42_v47  ;;  %187 = vmatpush.msra.mxu0 %v25_v49  ;;  %v115_v13 = vld [vmem:[%s1059_s1 + $0x2e8] sm:$0xff]  ;;  %v20_v14 = vld [vmem:[%s1060_s0] sm:$0xff]  ;;  %v97_v17 = vld [vmem:[%s1059_s1 + $0x258] sm:$0xff] }
  0x1c   :  { %247 = vmatpush.msra.mxu3 %v73_v50  ;;  %228 = vmatpush.msra.mxu2 %v56_v52  ;;  %v146_v16 = vld [vmem:[%s1059_s1 + $0x3e0] sm:$0xff]  ;;  %156 = vst [vmem:[#allocation1] ss:$4 sm:$0xff] %v20_v14  ;;  %v128_v19 = vld [vmem:[%s1059_s1 + $0x350] sm:$0xff]  ;;  %v145_v20 = vld [vmem:[%s1059_s1 + $0x3d8] sm:$0xff] }
  0x1d   :  { %207 = vmatpush.msra.mxu1 %v41_v51  ;;  %188 = vmatpush.msra.mxu0 %v24_v53  ;;  %v114_v18 = vld [vmem:[%s1059_s1 + $0x2e0] sm:$0xff]  ;;  %v96_v21 = vld [vmem:[%s1059_s1 + $0x250] sm:$0xff]  ;;  %v113_v22 = vld [vmem:[%s1059_s1 + $0x2d8] sm:$0xff] }
  0x1e   :  { %248 = vmatpush.msra.mxu3 %v72_v54  ;;  %229 = vmatpush.msra.mxu2 %v55_v56  ;;  %v127_v23 = vld [vmem:[%s1059_s1 + $0x348] sm:$0xff]  ;;  %v144_v24 = vld [vmem:[%s1059_s1 + $0x3d0] sm:$0xff]  ;;  %v126_v28 = vld [vmem:[%s1059_s1 + $0x340] sm:$0xff] }
  0x1f   :  { %208 = vmatpush.msra.mxu1 %v40_v55  ;;  %189 = vmatpush.msra.mxu0 %v23_v57  ;;  %v21_v25 = vld [vmem:[%s1060_s0 + $0x8] sm:$0xff]  ;;  %v112_v27 = vld [vmem:[%s1059_s1 + $0x2d0] sm:$0xff]  ;;  %v94_v30 = vld [vmem:[%s1059_s1 + $0x240] sm:$0xff] }
  0x20   :  { %249 = vmatpush.msra.mxu3 %v71_v58  ;;  %230 = vmatpush.msra.mxu2 %v54_v60  ;;  %v95_v26 = vld [vmem:[%s1059_s1 + $0x248] sm:$0xff]  ;;  %158 = vst [vmem:[#allocation1 + $0x20] ss:$4 sm:$0xff] %v21_v25  ;;  %v125_v32 = vld [vmem:[%s1059_s1 + $0x338] sm:$0xff]  ;;  %v142_v33 = vld [vmem:[%s1059_s1 + $0x3c0] sm:$0xff] }
  0x21   :  { %209 = vmatpush.msra.mxu1 %v39_v59  ;;  %190 = vmatpush.msra.mxu0 %v22_v61  ;;  %v143_v29 = vld [vmem:[%s1059_s1 + $0x3c8] sm:$0xff]  ;;  %v93_v34 = vld [vmem:[%s1059_s1 + $0x238] sm:$0xff]  ;;  %v110_v35 = vld [vmem:[%s1059_s1 + $0x2c0] sm:$0xff] }
  0x22   :  { %295 = vmatpush.msrb.mxu2 %v133_v62  ;;  %250 = vmatpush.msra.mxu3 %v70_v63  ;;  %v111_v31 = vld [vmem:[%s1059_s1 + $0x2c8] sm:$0xff]  ;;  %v124_v36 = vld [vmem:[%s1059_s1 + $0x330] sm:$0xff]  ;;  %v141_v37 = vld [vmem:[%s1059_s1 + $0x3b8] sm:$0xff] }
  0x23   :  { %255 = vmatpush.msrb.mxu0 %v101_v0  ;;  %210 = vmatpush.msra.mxu1 %v38_v3  ;;  %v92_v38 = vld [vmem:[%s1059_s1 + $0x230] sm:$0xff]  ;;  %v109_v39 = vld [vmem:[%s1059_s1 + $0x2b8] sm:$0xff]  ;;  %v123_v40 = vld [vmem:[%s1059_s1 + $0x328] sm:$0xff] }
  0x24   :  { %315 = vmatpush.msrb.mxu3 %v149_v1  ;;  %296 = vmatpush.msrb.mxu2 %v132_v2  ;;  %v140_v41 = vld [vmem:[%s1059_s1 + $0x3b0] sm:$0xff]  ;;  %v91_v42 = vld [vmem:[%s1059_s1 + $0x228] sm:$0xff]  ;;  %v122_v44 = vld [vmem:[%s1059_s1 + $0x320] sm:$0xff] }
  0x25   :  { %256 = vmatpush.msrb.mxu0 %v100_v4  ;;  %275 = vmatpush.msrb.mxu1 %v117_v5  ;;  %v108_v43 = vld [vmem:[%s1059_s1 + $0x2b0] sm:$0xff]  ;;  %v139_v45 = vld [vmem:[%s1059_s1 + $0x3a8] sm:$0xff]  ;;  %v90_v47 = vld [vmem:[%s1059_s1 + $0x220] sm:$0xff] }
  0x26   :  { %297 = vmatpush.msrb.mxu2 %v131_v6  ;;  %316 = vmatpush.msrb.mxu3 %v148_v7  ;;  %v161_v46 = vld.sshfl [vmem:[#allocation1 + $0x10] sm:$0xff pattern:$0x73625140]  ;;  %v107_v48 = vld [vmem:[%s1059_s1 + $0x2a8] sm:$0xff]  ;;  %v121_v49 = vld [vmem:[%s1059_s1 + $0x318] sm:$0xff] }
  0x27   :  { %257 = vmatpush.msrb.mxu0 %v99_v8  ;;  %276 = vmatpush.msrb.mxu1 %v116_v9  ;;  %v138_v50 = vld [vmem:[%s1059_s1 + $0x3a0] sm:$0xff]  ;;  %v162_v52 = vld.sshfl [vmem:[#allocation1 + $0x18] sm:$0xff pattern:$0x73625140]  ;;  %v120_v55 = vld [vmem:[%s1059_s1 + $0x310] sm:$0xff] }
  0x28   :  { %298 = vmatpush.msrb.mxu2 %v130_v10  ;;  %317 = vmatpush.msrb.mxu3 %v147_v11  ;;  %v159_v51 = vld.sshfl [vmem:[#allocation1] sm:$0xff pattern:$0x73625140]  ;;  %v89_v53 = vld [vmem:[%s1059_s1 + $0x218] sm:$0xff]  ;;  %v88_v58 = vld [vmem:[%s1059_s1 + $0x210] sm:$0xff] }
  0x29   :  { %258 = vmatpush.msrb.mxu0 %v98_v12  ;;  %277 = vmatpush.msrb.mxu1 %v115_v13  ;;  %v106_v54 = vld [vmem:[%s1059_s1 + $0x2a0] sm:$0xff]  ;;  %v137_v56 = vld [vmem:[%s1059_s1 + $0x398] sm:$0xff]  ;;  %v160_v57 = vld.sshfl [vmem:[#allocation1 + $0x8] sm:$0xff pattern:$0x73625140] }
  0x2a   :  { %299 = vmatpush.msrb.mxu2 %v129_v15  ;;  %318 = vmatpush.msrb.mxu3 %v146_v16  ;;  %v105_v59 = vld [vmem:[%s1059_s1 + $0x298] sm:$0xff]  ;;  %v119_v60 = vld [vmem:[%s1059_s1 + $0x308] sm:$0xff]  ;;  %v136_v61 = vld [vmem:[%s1059_s1 + $0x390] sm:$0xff] }
  0x2b   :  { %259 = vmatpush.msrb.mxu0 %v97_v17  ;;  %278 = vmatpush.msrb.mxu1 %v114_v18  ;;  %v87_v62 = vld [vmem:[%s1059_s1 + $0x208] sm:$0xff]  ;;  %v104_v63 = vld [vmem:[%s1059_s1 + $0x290] sm:$0xff]  ;;  %v118_v0 = vld [vmem:[%s1059_s1 + $0x300] sm:$0xff] }
  0x2c   :  { %300 = vmatpush.msrb.mxu2 %v128_v19  ;;  %319 = vmatpush.msrb.mxu3 %v145_v20  ;;  %v135_v1 = vld [vmem:[%s1059_s1 + $0x388] sm:$0xff]  ;;  %v165_v2 = vld.sshfl [vmem:[#allocation1 + $0x30] sm:$0xff pattern:$0x73625140]  ;;  %v86_v3 = vld [vmem:[%s1059_s1 + $0x200] sm:$0xff] }
  0x2d   :  { %260 = vmatpush.msrb.mxu0 %v96_v21  ;;  %279 = vmatpush.msrb.mxu1 %v113_v22  ;;  %v103_v4 = vld [vmem:[%s1059_s1 + $0x288] sm:$0xff]  ;;  %v134_v5 = vld [vmem:[%s1059_s1 + $0x380] sm:$0xff]  ;;  %v166_v7 = vld.sshfl [vmem:[#allocation1 + $0x38] sm:$0xff pattern:$0x73625140] }
  0x2e   :  { %301 = vmatpush.msrb.mxu2 %v127_v23  ;;  %320 = vmatpush.msrb.mxu3 %v144_v24  ;;  %v163_v6 = vld.sshfl [vmem:[#allocation1 + $0x20] sm:$0xff pattern:$0x73625140]  ;;  %v164_v9 = vld.sshfl [vmem:[#allocation1 + $0x28] sm:$0xff pattern:$0x73625140] }
  0x2f   :  { %261 = vmatpush.msrb.mxu0 %v95_v26  ;;  %280 = vmatpush.msrb.mxu1 %v112_v27  ;;  %v102_v8 = vld [vmem:[%s1059_s1 + $0x280] sm:$0xff]  ;;  %v345_v10 = vld [vmem:[%s1062_s3 + $0x50] sm:$0xff]  ;;  %v346_v11 = vld [vmem:[%s1062_s3 + $0x58] sm:$0xff] }
  0x30   :  { %302 = vmatpush.msrb.mxu2 %v126_v28  ;;  %321 = vmatpush.msrb.mxu3 %v143_v29  ;;  %v337_v12 = vld [vmem:[%s1062_s3 + $0x10] sm:$0xff]  ;;  %v338_v13 = vld [vmem:[%s1062_s3 + $0x18] sm:$0xff]  ;;  %v343_v14 = vld [vmem:[%s1062_s3 + $0x40] sm:$0xff] }
  0x31   :  { %262 = vmatpush.msrb.mxu0 %v94_v30  ;;  %281 = vmatpush.msrb.mxu1 %v111_v31  ;;  %v344_v15 = vld [vmem:[%s1062_s3 + $0x48] sm:$0xff]  ;;  %v335_v16 = vld [vmem:[%s1062_s3] sm:$0xff]  ;;  %v349_v18 = vld [vmem:[%s1062_s3 + $0x70] sm:$0xff] }
  0x32   :  { %303 = vmatpush.msrb.mxu2 %v125_v32  ;;  %322 = vmatpush.msrb.mxu3 %v142_v33  ;;  %v336_v17 = vld [vmem:[%s1062_s3 + $0x8] sm:$0xff]  ;;  %v350_v19 = vld [vmem:[%s1062_s3 + $0x78] sm:$0xff]  ;;  %v341_v20 = vld [vmem:[%s1062_s3 + $0x30] sm:$0xff] }
  0x33   :  { %263 = vmatpush.msrb.mxu0 %v93_v34  ;;  %282 = vmatpush.msrb.mxu1 %v110_v35  ;;  %v342_v21 = vld [vmem:[%s1062_s3 + $0x38] sm:$0xff]  ;;  %v347_v22 = vld [vmem:[%s1062_s3 + $0x60] sm:$0xff]  ;;  %v348_v23 = vld [vmem:[%s1062_s3 + $0x68] sm:$0xff] }
  0x34   :  { %304 = vmatpush.msrb.mxu2 %v124_v36  ;;  %323 = vmatpush.msrb.mxu3 %v141_v37  ;;  %v339_v24 = vld [vmem:[%s1062_s3 + $0x20] sm:$0xff]  ;;  %v340_v25 = vld [vmem:[%s1062_s3 + $0x28] sm:$0xff] }
  0x35   :  { %264 = vmatpush.msrb.mxu0 %v92_v38  ;;  %283 = vmatpush.msrb.mxu1 %v109_v39  ;;  %v572_v26 = vld [vmem:[%s1061_s2] ss:$0 sm:$0xff] }
  0x36   :  { %305 = vmatpush.msrb.mxu2 %v123_v40  ;;  %324 = vmatpush.msrb.mxu3 %v140_v41 }
  0x37   :  { %265 = vmatpush.msrb.mxu0 %v91_v42  ;;  %284 = vmatpush.msrb.mxu1 %v108_v43  ;;  %v351_v43 = vld [vmem:[%s1063_s4] sm:$0xff] }
  0x38   :  { %306 = vmatpush.msrb.mxu2 %v122_v44  ;;  %325 = vmatpush.msrb.mxu3 %v139_v45  ;;  %v354_v44 = vperm.slane %v351_v43, 1 }
  0x39   :  { %231 = vmatmul.f32.vlgmr.msra.gmra.mxu2 %v161_v46  ;;  %266 = vmatpush.msrb.mxu0 %v90_v47 }
  0x3a   :  { %285 = vmatpush.msrb.mxu1 %v107_v48  ;;  %307 = vmatpush.msrb.mxu2 %v121_v49  ;;  %v355_v48 = vperm.slane %v351_v43, 2  ;;  %v356_v49 = vperm.slane %v351_v43, 3 }
  0x3b   :  { %326 = vmatpush.msrb.mxu3 %v138_v50  ;;  %191 = vmatmul.f32.vlgmr.msra.gmra.mxu0 %v159_v51  ;;  %v353_v50 = vperm.slane %v351_v43, 0 }
  0x3c   :  { %251 = vmatmul.f32.vlgmr.msra.gmra.mxu3 %v162_v52  ;;  %267 = vmatpush.msrb.mxu0 %v89_v53 }
  0x3d   :  { %286 = vmatpush.msrb.mxu1 %v106_v54  ;;  %308 = vmatpush.msrb.mxu2 %v120_v55 }
  0x3e   :  { %327 = vmatpush.msrb.mxu3 %v137_v56  ;;  %211 = vmatmul.f32.vlgmr.msra.gmra.mxu1 %v160_v57  ;;  %v358_v56 = vperm.slane %v351_v43, 5 }
  0x3f   :  { %268 = vmatpush.msrb.mxu0 %v88_v58  ;;  %287 = vmatpush.msrb.mxu1 %v105_v59 }
  0x40   :  { %309 = vmatpush.msrb.mxu2 %v119_v60  ;;  %328 = vmatpush.msrb.mxu3 %v136_v61  ;;  %v359_v61 = vperm.slane %v351_v43, 6 }
  0x41   :  { %269 = vmatpush.msrb.mxu0 %v87_v62  ;;  %288 = vmatpush.msrb.mxu1 %v104_v63 }
  0x42   :  { %310 = vmatpush.msrb.mxu2 %v118_v0  ;;  %329 = vmatpush.msrb.mxu3 %v135_v1  ;;  %v360_v1 = vperm.slane %v351_v43, 7 }
  0x43   :  { %311 = vmatmul.f32.vlgmr.msrb.gmra.mxu2 %v165_v2  ;;  %270 = vmatpush.msrb.mxu0 %v86_v3  ;;  %v357_v3 = vperm.slane %v351_v43, 4 }
  0x44   :  { %289 = vmatpush.msrb.mxu1 %v103_v4  ;;  %330 = vmatpush.msrb.mxu3 %v134_v5 }
  0x45   :  { %271 = vmatmul.f32.vlgmr.msrb.gmra.mxu0 %v163_v6  ;;  %331 = vmatmul.f32.vlgmr.msrb.gmra.mxu3 %v166_v7 }
  0x46   :  { %290 = vmatpush.msrb.mxu1 %v102_v8  ;;  %427 = vmatpush.msra.mxu2 %v345_v10 }
  0x47   :  { %291 = vmatmul.f32.vlgmr.msrb.gmra.mxu1 %v164_v9  ;;  %447 = vmatpush.msra.mxu3 %v346_v11 }
  0x48   :  { %428 = vmatpush.msra.mxu2 %v337_v12  ;;  %387 = vmatpush.msra.mxu0 %v343_v14 }
  0x49   :  { %448 = vmatpush.msra.mxu3 %v338_v13  ;;  %407 = vmatpush.msra.mxu1 %v344_v15 }
  0x4a   :  { %388 = vmatpush.msra.mxu0 %v335_v16  ;;  %507 = vmatpush.msrb.mxu2 %v349_v18 }
  0x4b   :  { %408 = vmatpush.msra.mxu1 %v336_v17  ;;  %527 = vmatpush.msrb.mxu3 %v350_v19 }
  0x4c   :  { %467 = vmatpush.msrb.mxu0 %v347_v22  ;;  %508 = vmatpush.msrb.mxu2 %v341_v20 }
  0x4d   :  { %487 = vmatpush.msrb.mxu1 %v348_v23  ;;  %528 = vmatpush.msrb.mxu3 %v342_v21 }
  0x4e   :  { %468 = vmatpush.msrb.mxu0 %v339_v24 }
  0x4f   :  { %488 = vmatpush.msrb.mxu1 %v340_v25 }
  0xb8   :  { %v192_v27 = vpop.f32.mrf.mxu0 }
  0xb9   :  { %v193_v28 = vadd.f32 %v572_v26, %v192_v27 }
  0xbb   :  { %v212_v29 = vpop.f32.mrf.mxu1 }
  0xbc   :  { %v213_v30 = vadd.f32 %v212_v29, %v193_v28  ;;  %v232_v31 = vpop.f32.mrf.mxu2 }
  0xbe   :  { %v233_v32 = vadd.f32 %v232_v31, %v213_v30 }
  0xbf   :  { %v252_v33 = vpop.f32.mrf.mxu3 }
  0xc0   :  { %v253_v34 = vadd.f32 %v252_v33, %v233_v32 }
  0xc2   :  { %v272_v35 = vpop.f32.mrf.mxu0 }
  0xc3   :  { %v273_v36 = vadd.f32 %v272_v35, %v253_v34 }
  0xc4   :  { %v292_v37 = vpop.f32.mrf.mxu1 }
  0xc5   :  { %v293_v38 = vadd.f32 %v292_v37, %v273_v36 }
  0xc6   :  { %v312_v39 = vpop.f32.mrf.mxu2 }
  0xc7   :  { %v313_v40 = vadd.f32 %v312_v39, %v293_v38 }
  0xc8   :  { %v332_v41 = vpop.f32.mrf.mxu3 }
  0xc9   :  { %v333_v42 = vadd.f32 %v332_v41, %v313_v40 }
  0xcb   :  { %564 = vmatmul.msk.f32.vlgmr.msra.gmra.mxu0 %vm369_vm0, %v333_v42  ;;  %565 = vmatmul.msk.f32.vlgmr.msra.gmra.mxu1 %vm369_vm0, %v333_v42 }
  0xcc   :  { %566 = vmatmul.msk.f32.vlgmr.msra.gmra.mxu2 %vm369_vm0, %v333_v42  ;;  %567 = vmatmul.msk.f32.vlgmr.msra.gmra.mxu3 %vm369_vm0, %v333_v42 }
  0xd3   :  { %568 = vmatmul.msk.f32.vlgmr.msrb.gmra.mxu0 %vm369_vm0, %v333_v42  ;;  %569 = vmatmul.msk.f32.vlgmr.msrb.gmra.mxu1 %vm369_vm0, %v333_v42 }
  0xd4   :  { %570 = vmatmul.msk.f32.vlgmr.msrb.gmra.mxu2 %vm369_vm0, %v333_v42  ;;  %571 = vmatmul.msk.f32.vlgmr.msrb.gmra.mxu3 %vm369_vm0, %v333_v42 }
 0x148   :  { %v410_v45 = vpop.f32.mrf.mxu1  ;;  %v390_v46 = vpop.f32.mrf.mxu0 }
 0x149   :  { %v411_v47 = vadd.f32 %v410_v45, %v354_v44  ;;  %v391_v58 = vadd.f32 %v390_v46, %v353_v50 }
 0x14b   :  { %v541_v53 = vrot.slane %v411_v47, 6 }
 0x14d   :  { %v548_v62 = vsel %vm547_vm1, %v391_v58, %v541_v53 }
 0x14f   :  { %v430_v51 = vpop.f32.mrf.mxu2  ;;  %v450_v52 = vpop.f32.mrf.mxu3 }
 0x150   :  { %v431_v54 = vadd.f32 %v430_v51, %v355_v48  ;;  %v451_v55 = vadd.f32 %v450_v52, %v356_v49  ;;  %v490_v57 = vpop.f32.mrf.mxu1  ;;  %v470_v4 = vpop.f32.mrf.mxu0 }
 0x151   :  { %v491_v0 = vadd.f32 %v490_v57, %v358_v56  ;;  %v471_v10 = vadd.f32 %v470_v4, %v357_v3 }
 0x152   :  { %v542_v59 = vrot.slane %v431_v54, 4  ;;  %v543_v60 = vrot.slane %v451_v55, 2 }
 0x153   :  { %v544_v7 = vrot.slane %v491_v0, 6 }
 0x154   :  { %v550_v63 = vsel %vm549_vm2, %v542_v59, %v543_v60 }
 0x155   :  { %v552_v2 = vsel %vm551_vm3, %v548_v62, %v550_v63  ;;  %v553_v13 = vsel %vm547_vm1, %v471_v10, %v544_v7 }
 0x156   :  { %558 = vst [vmem:[%s1064_s5] sm:$0xff] %v552_v2 }
 0x157   :  { %v510_v5 = vpop.f32.mrf.mxu2  ;;  %v530_v6 = vpop.f32.mrf.mxu3 }
 0x158   :  { %v511_v8 = vadd.f32 %v510_v5, %v359_v61  ;;  %v531_v9 = vadd.f32 %v530_v6, %v360_v1 }
 0x15a   :  { %v545_v11 = vrot.slane %v511_v8, 4  ;;  %v546_v12 = vrot.slane %v531_v9, 2 }
 0x15c   :  { %v554_v14 = vsel %vm549_vm2, %v545_v11, %v546_v12 }
 0x15d   :  { %v555_v15 = vsel %vm551_vm3, %v553_v13, %v554_v14 }
 0x15e   :  { %559 = vst [vmem:[%s1064_s5 + $0x8] sm:$0xff] %v555_v15 }

// kernel: tile.23
= control target key start
LH: loop header
LB: loop body
LE: loop exit
PB: predicated region body
PF: predicated region fallthrough
CT: control target
= control target key end

     0   :  { %s22_s0 = inlined_call_operand.vmem [shape: f32[8], index: 0, kind: input, shape index: {}]   ;;  %s23_s1 = inlined_call_operand.vmem [shape: f32[4,8], index: 1, kind: output, shape index: {}]  }
   0x1   :  { %v4_v0 = vld [vmem:[%s22_s0] ss:$0 sm:$0xff] }
   0x2   :  { %5 = vst [vmem:[%s23_s1] sm:$0xf] %v4_v0 }

// kernel: mul.74
= control target key start
LH: loop header
LB: loop body
LE: loop exit
PB: predicated region body
PF: predicated region fallthrough
CT: control target
= control target key end

     0   :  { %s37_s8 = smov 8   ;;  %s38_s9 = smov 16   ;;  %vm7_vm0 = vcmask 64512   ;;  %vm13_vm1 = vcmask 261312   ;;  %vm19_vm2 = vcmask 195712   ;;  %vm25_vm3 = vcmask 130112   ;;  %s55_s0 = inlined_call_operand.vmem [shape: f32[4,8], index: 0, kind: input, shape index: {}]   ;;  %s56_s1 = inlined_call_operand.vmem [shape: f32[32], index: 1, kind: output, shape index: {}]  }
   0x1   :  { %v4_v0 = vld [vmem:[%s55_s0] sm:$0xf]  ;;  %s36_s0 = smov 24  }
   0x2   :  { %5 = vst [vmem:[#allocation1] sm:$0xf] %v4_v0 }
   0x9   :  { %v10_v1 = vld [vmem:[#allocation1 + $0x3] sm:$0x1]   ;;  %v22_v2 = vld [vmem:[#allocation1 + $0x1] sm:$0x1]   ;;  %v16_v3 = vld [vmem:[#allocation1 + $0x2] sm:$0x1]  }
   0xa   :  { %11 = vrot.lane.b32.xlu0 %v10_v1, %s36_s0  ;;  %23 = vrot.lane.b32.xlu1 %v22_v2, %s37_s8  ;;  %v6_v4 = vld [vmem:[#allocation1] sm:$0x1]  }
   0xb   :  { %8 = vst.msk [vmem:[#allocation0] sm:$0x1] %vm7_vm0, %v6_v4  }
  0x12   :  { %17 = vrot.lane.b32.xlu0 %v16_v3, %s38_s9 }
  0x7c   :  { %v12_v5 = vpop.permute.xlu0 %11   ;;  %v24_v6 = vpop.permute.xlu1 %23  }
  0x7d   :  { %14 = vst.msk [vmem:[#allocation0] sm:$0x1] %vm13_vm1, %v12_v5  }
  0x84   :  { %v18_v7 = vpop.permute.xlu0 %17  }
  0x85   :  { %20 = vst.msk [vmem:[#allocation0] sm:$0x1] %vm19_vm2, %v18_v7  }
  0x86   :  { %26 = vst.msk [vmem:[#allocation0] sm:$0x1] %vm25_vm3, %v24_v6  }
  0x8d   :  { %v29_v8 = vld [vmem:[#allocation0] sm:$0x1] }
  0x8e   :  { %32 = vst [vmem:[%s56_s1] sm:$0x1] %v29_v8 }

// kernel: tile.0
= control target key start
LH: loop header
LB: loop body
LE: loop exit
PB: predicated region body
PF: predicated region fallthrough
CT: control target
= control target key end

     0   :  { %s66_s8 = smov 125   ;;  %s67_s9 = smov 123   ;;  %vm7_vm0 = vcmask 7168   ;;  %s117_s0 = inlined_call_operand.vmem [shape: f32[4,8], index: 0, kind: input, shape index: {}]   ;;  %s118_s1 = inlined_call_operand.vmem [shape: f32[32,1], index: 1, kind: output, shape index: {}]  }
   0x1   :  { %v4_v0 = vld [vmem:[%s117_s0] sm:$0xf]  ;;  %s65_s0 = smov 127   ;;  %s68_s10 = smov 126  }
   0x2   :  { %5 = vst [vmem:[#allocation0] sm:$0xf] %v4_v0  ;;  %s69_s11 = smov 124   ;;  %s70_s12 = smov 122  }
   0x3   :  { %s71_s13 = smov 121  }
   0x9   :  { %v9_v1 = vld [vmem:[#allocation0] sm:$0xf]  }
   0xa   :  { %v21_v2 = vld [vmem:[#allocation0] sm:$0xf]   ;;  %10 = vrot.lane.b32.xlu0 %v9_v1, %s65_s0 }
   0xb   :  { %22 = vrot.lane.b32.xlu1 %v21_v2, %s66_s8  ;;  %v33_v3 = vld [vmem:[#allocation0] sm:$0xf]  }
   0xc   :  { %34 = vrot.lane.b32.xlu2 %v33_v3, %s67_s9  ;;  %v15_v4 = vld [vmem:[#allocation0] sm:$0xf]  }
   0xd   :  { %v27_v5 = vld [vmem:[#allocation0] sm:$0xf]  }
   0xe   :  { %v39_v6 = vld [vmem:[#allocation0] sm:$0xf]  }
   0xf   :  { %v45_v7 = vld [vmem:[#allocation0] sm:$0xf]  }
  0x10   :  { %v6_v8 = vld [vmem:[#allocation0] sm:$0xf]  }
  0x11   :  { %8 = vst.msk [vmem:[%s118_s1] ss:$8 sm:$0xf] %vm7_vm0, %v6_v8  }
  0x12   :  { %16 = vrot.lane.b32.xlu0 %v15_v4, %s68_s10 }
  0x13   :  { %28 = vrot.lane.b32.xlu1 %v27_v5, %s69_s11 }
  0x14   :  { %40 = vrot.lane.b32.xlu2 %v39_v6, %s70_s12 }
  0x1a   :  { %46 = vrot.lane.b32.xlu0 %v45_v7, %s71_s13 }
  0x66   :  { %v35_v9 = vpop.permute.xlu2 %34  }
  0x67   :  { %55 = vst.msk [vmem:[%s118_s1 + $0x5] ss:$8 sm:$0xf] %vm7_vm0, %v35_v9  }
  0x6e   :  { %v41_v10 = vpop.permute.xlu2 %40  }
  0x6f   :  { %56 = vst.msk [vmem:[%s118_s1 + $0x6] ss:$8 sm:$0xf] %vm7_vm0, %v41_v10  }
  0x7c   :  { %v11_v11 = vpop.permute.xlu0 %10  }
  0x7d   :  { %v23_v12 = vpop.permute.xlu1 %22   ;;  %51 = vst.msk [vmem:[%s118_s1 + $0x1] ss:$8 sm:$0xf] %vm7_vm0, %v11_v11  }
  0x7e   :  { %53 = vst.msk [vmem:[%s118_s1 + $0x3] ss:$8 sm:$0xf] %vm7_vm0, %v23_v12  }
  0x84   :  { %v17_v13 = vpop.permute.xlu0 %16  }
  0x85   :  { %v29_v14 = vpop.permute.xlu1 %28   ;;  %52 = vst.msk [vmem:[%s118_s1 + $0x2] ss:$8 sm:$0xf] %vm7_vm0, %v17_v13  }
  0x86   :  { %54 = vst.msk [vmem:[%s118_s1 + $0x4] ss:$8 sm:$0xf] %vm7_vm0, %v29_v14  }
  0x8c   :  { %v47_v15 = vpop.permute.xlu0 %46  }
  0x8d   :  { %57 = vst.msk [vmem:[%s118_s1 + $0x7] ss:$8 sm:$0xf] %vm7_vm0, %v47_v15  }

// kernel: cvae_forward.16
= control target key start
LH: loop header
LB: loop body
LE: loop exit
PB: predicated region body
PF: predicated region fallthrough
CT: control target
= control target key end

     0   :  { %v194_v3 = vmov 0   ;;  %vm64_vm0 = vcmask 130048   ;;  %s321_s0 = inlined_call_operand.vmem [shape: f32[144,128], index: 0, kind: input, shape index: {}]   ;;  %s322_s1 = inlined_call_operand.vmem [shape: f32[32,144], index: 1, kind: input, shape index: {}]   ;;  %s323_s2 = inlined_call_operand.vmem [shape: f32[32,1], index: 2, kind: input, shape index: {}]   ;;  %s324_s3 = inlined_call_operand.vmem [shape: f32[32,128], index: 3, kind: output, shape index: {}]  }
   0x1   :  { %v37_v0 = vld [vmem:[%s321_s0 + $0x78] sm:$0xff]  ;;  %v36_v1 = vld [vmem:[%s321_s0 + $0x70] sm:$0xff]  ;;  %v35_v2 = vld [vmem:[%s321_s0 + $0x68] sm:$0xff]  ;;  %193 = vset.pattern.permute.xlu1 %v194_v3  ;;  %192 = vset.pattern.permute.xlu0 %v194_v3 }
   0x2   :  { %77 = vmatpush.msra.mxu0 %v37_v0  ;;  %159 = vmatpush.msra.mxu2 %v37_v0  ;;  %v39_v4 = vld [vmem:[%s321_s0 + $0x88] sm:$0xff]  ;;  %v34_v5 = vld [vmem:[%s321_s0 + $0x60] sm:$0xff]  ;;  %v33_v8 = vld [vmem:[%s321_s0 + $0x58] sm:$0xff] }
   0x3   :  { %160 = vmatpush.msra.mxu3 %v37_v0  ;;  %120 = vmatpush.msra.mxu1 %v39_v4  ;;  %v38_v6 = vld [vmem:[%s321_s0 + $0x80] sm:$0xff]  ;;  %v15_v7 = vld [vmem:[%s322_s1 + $0x8] sm:$0xff]  ;;  %v32_v9 = vld [vmem:[%s321_s0 + $0x50] sm:$0xff] }
   0x4   :  { %78 = vmatpush.msra.mxu0 %v36_v1  ;;  %161 = vmatpush.msra.mxu2 %v36_v1  ;;  %v42_v10 = vld [vmem:[%s323_s2 + $0x10] sm:$0xff]  ;;  %v31_v11 = vld [vmem:[%s321_s0 + $0x48] sm:$0xff]  ;;  %v40_v12 = vld [vmem:[%s323_s2] sm:$0xff] }
   0x5   :  { %162 = vmatpush.msra.mxu3 %v36_v1  ;;  %121 = vmatpush.msra.mxu1 %v38_v6  ;;  %v30_v13 = vld [vmem:[%s321_s0 + $0x40] sm:$0xff]  ;;  %v17_v14 = vld [vmem:[%s322_s1 + $0x18] sm:$0xff]  ;;  %v28_v16 = vld [vmem:[%s321_s0 + $0x30] sm:$0xff] }
   0x6   :  { %79 = vmatpush.msra.mxu0 %v35_v2  ;;  %163 = vmatpush.msra.mxu2 %v35_v2  ;;  %v29_v15 = vld [vmem:[%s321_s0 + $0x38] sm:$0xff]  ;;  %v27_v18 = vld [vmem:[%s321_s0 + $0x28] sm:$0xff]  ;;  %v26_v20 = vld [vmem:[%s321_s0 + $0x20] sm:$0xff] }
   0x7   :  { %164 = vmatpush.msra.mxu3 %v35_v2  ;;  %155 = vmatmul.msk.f32.vlgmr.msra.gmra.mxu1 %vm64_vm0, %v15_v7  ;;  %v43_v17 = vld [vmem:[%s323_s2 + $0x18] sm:$0xff]  ;;  %v41_v19 = vld [vmem:[%s323_s2 + $0x8] sm:$0xff]  ;;  %v24_v23 = vld [vmem:[%s321_s0 + $0x10] sm:$0xff] }
   0x8   :  { %80 = vmatpush.msra.mxu0 %v34_v5  ;;  %165 = vmatpush.msra.mxu2 %v34_v5  ;;  %v19_v21 = vld [vmem:[%s322_s1 + $0x28] sm:$0xff]  ;;  %v25_v22 = vld [vmem:[%s321_s0 + $0x18] sm:$0xff]  ;;  %v22_v25 = vld [vmem:[%s321_s0] sm:$0xff] }
   0x9   :  { %166 = vmatpush.msra.mxu3 %v34_v5  ;;  %56 = vperm.xlu1 %193, %v42_v10   ;;  %v23_v24 = vld [vmem:[%s321_s0 + $0x8] sm:$0xff]  ;;  %v14_v26 = vld [vmem:[%s322_s1] sm:$0xff]  ;;  %v16_v27 = vld [vmem:[%s322_s1 + $0x10] sm:$0xff] }
   0xa   :  { %81 = vmatpush.msra.mxu0 %v33_v8  ;;  %167 = vmatpush.msra.mxu2 %v33_v8  ;;  %v18_v28 = vld [vmem:[%s322_s1 + $0x20] sm:$0xff]  ;;  %v21_v29 = vld [vmem:[%s322_s1 + $0x38] sm:$0xff]  ;;  %v20_v30 = vld [vmem:[%s322_s1 + $0x30] sm:$0xff] }
   0xb   :  { %168 = vmatpush.msra.mxu3 %v33_v8  ;;  %46 = vperm.xlu0 %192, %v40_v12  }
   0xc   :  { %82 = vmatpush.msra.mxu0 %v32_v9  ;;  %169 = vmatpush.msra.mxu2 %v32_v9 }
   0xd   :  { %170 = vmatpush.msra.mxu3 %v32_v9 }
   0xe   :  { %83 = vmatpush.msra.mxu0 %v31_v11  ;;  %171 = vmatpush.msra.mxu2 %v31_v11 }
   0xf   :  { %172 = vmatpush.msra.mxu3 %v31_v11  ;;  %156 = vmatmul.msk.f32.gmra.mxu1 %vm64_vm0, %v17_v14 }
  0x10   :  { %84 = vmatpush.msra.mxu0 %v30_v13  ;;  %173 = vmatpush.msra.mxu2 %v30_v13 }
  0x11   :  { %174 = vmatpush.msra.mxu3 %v30_v13  ;;  %61 = vperm.xlu1 %193, %v43_v17  }
  0x12   :  { %85 = vmatpush.msra.mxu0 %v29_v15  ;;  %175 = vmatpush.msra.mxu2 %v29_v15 }
  0x13   :  { %176 = vmatpush.msra.mxu3 %v29_v15  ;;  %51 = vperm.xlu0 %192, %v41_v19  }
  0x14   :  { %86 = vmatpush.msra.mxu0 %v28_v16  ;;  %177 = vmatpush.msra.mxu2 %v28_v16 }
  0x15   :  { %178 = vmatpush.msra.mxu3 %v28_v16 }
  0x16   :  { %87 = vmatpush.msra.mxu0 %v27_v18  ;;  %179 = vmatpush.msra.mxu2 %v27_v18 }
  0x17   :  { %180 = vmatpush.msra.mxu3 %v27_v18  ;;  %157 = vmatmul.msk.f32.gmra.mxu1 %vm64_vm0, %v19_v21 }
  0x18   :  { %88 = vmatpush.msra.mxu0 %v26_v20  ;;  %181 = vmatpush.msra.mxu2 %v26_v20 }
  0x19   :  { %182 = vmatpush.msra.mxu3 %v26_v20 }
  0x1a   :  { %89 = vmatpush.msra.mxu0 %v25_v22  ;;  %183 = vmatpush.msra.mxu2 %v25_v22 }
  0x1b   :  { %184 = vmatpush.msra.mxu3 %v25_v22 }
  0x1c   :  { %90 = vmatpush.msra.mxu0 %v24_v23  ;;  %185 = vmatpush.msra.mxu2 %v24_v23 }
  0x1d   :  { %186 = vmatpush.msra.mxu3 %v24_v23 }
  0x1e   :  { %91 = vmatpush.msra.mxu0 %v23_v24  ;;  %187 = vmatpush.msra.mxu2 %v23_v24 }
  0x1f   :  { %188 = vmatpush.msra.mxu3 %v23_v24  ;;  %158 = vmatmul.msk.f32.gmra.mxu1 %vm64_vm0, %v21_v29 }
  0x20   :  { %92 = vmatpush.msra.mxu0 %v22_v25  ;;  %189 = vmatpush.msra.mxu2 %v22_v25 }
  0x21   :  { %190 = vmatpush.msra.mxu3 %v22_v25  ;;  %93 = vmatmul.f32.vlgmr.msra.gmra.mxu0 %v14_v26 }
  0x22   :  { %96 = vmatmul.f32.vlgmr.msra.gmra.mxu2 %v16_v27  ;;  %99 = vmatmul.f32.vlgmr.msra.gmra.mxu3 %v18_v28 }
  0x2a   :  { %102 = vmatmul.f32.gmra.mxu3 %v20_v30 }
  0x7b   :  { %v57_v37 = vpop.permute.xlu1 %56 }
  0x7d   :  { %v47_v32 = vpop.permute.xlu0 %46 }
  0x83   :  { %v62_v50 = vpop.permute.xlu1 %61 }
  0x84   :  { %v123_v31 = vpop.f32.mrf.mxu1 }
  0x85   :  { %v52_v39 = vpop.permute.xlu0 %51 }
  0x8c   :  { %v126_v33 = vpop.f32.mrf.mxu1 }
  0x94   :  { %v129_v40 = vpop.f32.mrf.mxu1 }
  0x9c   :  { %v132_v54 = vpop.f32.mrf.mxu1 }
  0x9e   :  { %v94_v34 = vpop.f32.mrf.mxu0 }
  0x9f   :  { %v95_v35 = vadd.f32 %v94_v34, %v47_v32 }
  0xa1   :  { %v124_v36 = vadd.f32 %v123_v31, %v95_v35 }
  0xa3   :  { %vm135_vm1 = vcmp.ge.f32.partialorder %v124_v36, 0.0  ;;  %v139_v38 = vmul.f32 0.01, %v124_v36 }
  0xa5   :  { %v143_v41 = vsel %vm135_vm1, %v124_v36, %v139_v38  ;;  %v97_v42 = vpop.f32.mrf.mxu2  ;;  %v100_v43 = vpop.f32.mrf.mxu3 }
  0xa6   :  { %147 = vst [vmem:[%s324_s3] sm:$0xff] %v143_v41  ;;  %v98_v44 = vadd.f32 %v97_v42, %v52_v39  ;;  %v101_v45 = vadd.f32 %v100_v43, %v57_v37 }
  0xa8   :  { %v127_v46 = vadd.f32 %v126_v33, %v98_v44  ;;  %v130_v47 = vadd.f32 %v129_v40, %v101_v45 }
  0xaa   :  { %vm136_vm2 = vcmp.ge.f32.partialorder %v127_v46, 0.0  ;;  %v140_v48 = vmul.f32 0.01, %v127_v46  ;;  %vm137_vm3 = vcmp.ge.f32.partialorder %v130_v47, 0.0  ;;  %v141_v49 = vmul.f32 0.01, %v130_v47 }
  0xac   :  { %v144_v51 = vsel %vm136_vm2, %v127_v46, %v140_v48  ;;  %v145_v52 = vsel %vm137_vm3, %v130_v47, %v141_v49 }
  0xad   :  { %148 = vst [vmem:[%s324_s3 + $0x8] sm:$0xff] %v144_v51  ;;  %v103_v53 = vpop.f32.mrf.mxu3 }
  0xae   :  { %149 = vst [vmem:[%s324_s3 + $0x10] sm:$0xff] %v145_v52  ;;  %v104_v55 = vadd.f32 %v103_v53, %v62_v50 }
  0xb0   :  { %v133_v56 = vadd.f32 %v132_v54, %v104_v55 }
  0xb2   :  { %vm138_vm4 = vcmp.ge.f32.partialorder %v133_v56, 0.0  ;;  %v142_v57 = vmul.f32 0.01, %v133_v56 }
  0xb4   :  { %v146_v58 = vsel %vm138_vm4, %v133_v56, %v142_v57 }
  0xb5   :  { %150 = vst [vmem:[%s324_s3 + $0x18] sm:$0xff] %v146_v58 }

// kernel: tile.33
= control target key start
LH: loop header
LB: loop body
LE: loop exit
PB: predicated region body
PF: predicated region fallthrough
CT: control target
= control target key end

     0   :  { %s22_s0 = inlined_call_operand.vmem [shape: f32[3], index: 0, kind: input, shape index: {}]   ;;  %s23_s1 = inlined_call_operand.vmem [shape: f32[4,3], index: 1, kind: output, shape index: {}]  }
   0x1   :  { %v4_v0 = vld [vmem:[%s22_s0] ss:$0 sm:$0xff] }
   0x2   :  { %5 = vst [vmem:[%s23_s1] sm:$0xf] %v4_v0 }

// kernel: tile.1
= control target key start
LH: loop header
LB: loop body
LE: loop exit
PB: predicated region body
PF: predicated region fallthrough
CT: control target
= control target key end

     0   :  { %s26_s8 = smov 126   ;;  %vm7_vm0 = vcmask 7168   ;;  %s49_s0 = inlined_call_operand.vmem [shape: f32[4,3], index: 0, kind: input, shape index: {}]   ;;  %s50_s1 = inlined_call_operand.vmem [shape: f32[12,1], index: 1, kind: output, shape index: {}]  }
   0x1   :  { %v4_v0 = vld [vmem:[%s49_s0] sm:$0xf]  ;;  %s25_s0 = smov 127  }
   0x2   :  { %5 = vst [vmem:[#allocation0] sm:$0xf] %v4_v0 }
   0x9   :  { %v9_v1 = vld [vmem:[#allocation0] sm:$0xf]  }
   0xa   :  { %10 = vrot.lane.b32.xlu0 %v9_v1, %s25_s0  ;;  %v15_v2 = vld [vmem:[#allocation0] sm:$0xf]  }
   0xb   :  { %v6_v3 = vld [vmem:[#allocation0] sm:$0xf]  }
   0xc   :  { %8 = vst.msk [vmem:[%s50_s1] ss:$3 sm:$0xf] %vm7_vm0, %v6_v3  }
  0x12   :  { %16 = vrot.lane.b32.xlu0 %v15_v2, %s26_s8 }
  0x7c   :  { %v11_v4 = vpop.permute.xlu0 %10  }
  0x7d   :  { %21 = vst.msk [vmem:[%s50_s1 + $0x1] ss:$3 sm:$0xf] %vm7_vm0, %v11_v4  }
  0x84   :  { %v17_v5 = vpop.permute.xlu0 %16  }
  0x85   :  { %22 = vst.msk [vmem:[%s50_s1 + $0x2] ss:$3 sm:$0xf] %vm7_vm0, %v17_v5  }

// kernel: cvae_forward.17
= control target key start
LH: loop header
LB: loop body
LE: loop exit
PB: predicated region body
PF: predicated region fallthrough
CT: control target
= control target key end

     0   :  { %s619_s18 = smov 0   ;;  %s621_s19 = smov 0   ;;  %s767_s0 = inlined_call_operand.vmem [shape: f32[72,512], index: 0, kind: input, shape index: {}]   ;;  %s768_s1 = inlined_call_operand.vmem [shape: f32[12,72], index: 1, kind: input, shape index: {}]   ;;  %s769_s2 = inlined_call_operand.vmem [shape: f32[12,1], index: 2, kind: input, shape index: {}]   ;;  %s770_s3 = inlined_call_operand.vmem [shape: f32[12,1], index: 3, kind: input, shape index: {}]   ;;  %s771_s4 = inlined_call_operand.vmem [shape: f32[12,1], index: 4, kind: input, shape index: {}]   ;;  %s772_s5 = inlined_call_operand.vmem [shape: f32[12,512], index: 5, kind: output, shape index: {}]  }
   0x1   :  { %s623_s20 = smov 0  }
   0x2 LB: > { %s489_s21 = sadd.s32 4294967295, %s586_s20   ;;  %s636_s22 = sadd.s32 1, %s586_s20   ;;  %s586_s20 = sphi %s623_s20, %s776_s20   ;;  %s582_s19 = sphi %s621_s19, %s775_s19   ;;  %s578_s18 = sphi %s619_s18, %s774_s18  }
   0x3   : > { %s19_s23 = ssub.s32 %s586_s20, %s636_s22  ;;  %s22_s24 = sadd.s32 1, %s582_s19 }
   0x4   : > { %p20_p0 = scmp.eq.s32.totalorder %s19_s23, 0  ;;  %p29_p1 = scmp.ne.s32.totalorder %s582_s19, %s578_s18 }
   0x5   : > { %p30_p2 = scmp.eq.s32.totalorder %s586_s20, 0  ;;  %p143_p3 = scmp.eq.s32.totalorder %s489_s21, 1 }
   0x6   : > { %s647_s25 = scalar_select %p20_p0, %s582_s19, %s22_s24  }
   0x7   : > { %p31_p4 = por %p30_p2, %p29_p1  ;;  %p649_p5 = por %p143_p3, %p29_p1 }
   0x8   : > { %p492_p6 = scmp.ge.s32.totalorder %s586_s20, 2 }
   0xa   : > { %177 = sbr.rel (%p492_p6) target bundleno = 37 (0x25), region = 32 }
   0xf   : > { %180 = sbr.rel (!%p31_p4) target bundleno = 37 (0x25), region = 36  ;;  %s182_s27 = sand.u32 (%p31_p4), 1, %s582_s19  }
  0x10   : > { %s506_s28 = sshll.u32 (%p31_p4), %s586_s20, 4  ;;  %s526_s29 = smul.u32 (%p31_p4), 144, %s182_s27 }
  0x11   : > { %s659_s7 = scalar_lea.vmem (%p31_p4), %s767_s0, %s506_s28 }
  0x12   : > { %v200_v0 = vld [vmem:[%s659_s7] sm:$0xff] (%p31_p4)  ;;  %v202_v1 = vld [vmem:[%s659_s7 + $0x8] sm:$0xff] (%p31_p4)  ;;  %s664_s8 = scalar_lea.vmem (%p31_p4), [#allocation2], %s526_s29 }
  0x13   : > { %v204_v2 = vld [vmem:[%s659_s7 + $0x20] sm:$0xff] (%p31_p4)  ;;  %201 = vst [vmem:[%s664_s8] sm:$0xff] (%p31_p4), %v200_v0  ;;  %v206_v3 = vld [vmem:[%s659_s7 + $0x28] sm:$0xff] (%p31_p4) }
  0x14   : > { %203 = vst [vmem:[%s664_s8 + $0x8] sm:$0xff] %v202_v1  ;;  %v208_v4 = vld [vmem:[%s659_s7 + $0x40] sm:$0xff]  ;;  %v210_v5 = vld [vmem:[%s659_s7 + $0x48] sm:$0xff] }
  0x15   : > { %205 = vst [vmem:[%s664_s8 + $0x10] sm:$0xff] %v204_v2  ;;  %v212_v6 = vld [vmem:[%s659_s7 + $0x60] sm:$0xff]  ;;  %v214_v7 = vld [vmem:[%s659_s7 + $0x68] sm:$0xff] }
  0x16   : > { %207 = vst [vmem:[%s664_s8 + $0x18] sm:$0xff] %v206_v3  ;;  %v216_v8 = vld [vmem:[%s659_s7 + $0x80] sm:$0xff]  ;;  %v218_v9 = vld [vmem:[%s659_s7 + $0x88] sm:$0xff] }
  0x17   : > { %209 = vst [vmem:[%s664_s8 + $0x20] sm:$0xff] %v208_v4  ;;  %v220_v10 = vld [vmem:[%s659_s7 + $0xa0] sm:$0xff]  ;;  %v222_v11 = vld [vmem:[%s659_s7 + $0xa8] sm:$0xff] }
  0x18   : > { %211 = vst [vmem:[%s664_s8 + $0x28] sm:$0xff] %v210_v5  ;;  %v224_v12 = vld [vmem:[%s659_s7 + $0xc0] sm:$0xff]  ;;  %v226_v13 = vld [vmem:[%s659_s7 + $0xc8] sm:$0xff] }
  0x19   : > { %213 = vst [vmem:[%s664_s8 + $0x30] sm:$0xff] %v212_v6  ;;  %v228_v14 = vld [vmem:[%s659_s7 + $0xe0] sm:$0xff]  ;;  %v230_v15 = vld [vmem:[%s659_s7 + $0xe8] sm:$0xff] }
  0x1a   : > { %215 = vst [vmem:[%s664_s8 + $0x38] sm:$0xff] %v214_v7  ;;  %v232_v16 = vld [vmem:[%s659_s7 + $0x100] sm:$0xff]  ;;  %v234_v17 = vld [vmem:[%s659_s7 + $0x108] sm:$0xff] }
  0x1b   : > { %217 = vst [vmem:[%s664_s8 + $0x40] sm:$0xff] %v216_v8 }
  0x1c   : > { %219 = vst [vmem:[%s664_s8 + $0x48] sm:$0xff] %v218_v9 }
  0x1d   : > { %221 = vst [vmem:[%s664_s8 + $0x50] sm:$0xff] %v220_v10 }
  0x1e   : > { %223 = vst [vmem:[%s664_s8 + $0x58] sm:$0xff] %v222_v11 }
  0x1f   : > { %225 = vst [vmem:[%s664_s8 + $0x60] sm:$0xff] %v224_v12 }
  0x20   : > { %227 = vst [vmem:[%s664_s8 + $0x68] sm:$0xff] %v226_v13 }
  0x21   : > { %229 = vst [vmem:[%s664_s8 + $0x70] sm:$0xff] %v228_v14 }
  0x22   : > { %231 = vst [vmem:[%s664_s8 + $0x78] sm:$0xff] %v230_v15 }
  0x23   : > { %233 = vst [vmem:[%s664_s8 + $0x80] sm:$0xff] %v232_v16 }
  0x24   : > { %235 = vst [vmem:[%s664_s8 + $0x88] sm:$0xff] %v234_v17 }
  0x25 PF: > { %p495_p7 = scmp.ge.s32.totalorder %s586_s20, 1  ;;  %p240_p8 = scmp.lt.s32.totalorder %s586_s20, 3 }
  0x27   : > { %p241_p9 = pnand %p495_p7, %p240_p8 }
  0x28   : > { %s247_s9 = sand.u32 (!%p241_p9), 1, %s578_s18  }
  0x29   : > { %244 = sbr.rel (%p241_p9) target bundleno = 223 (0xdf), region = 59  ;;  %s496_s11 = sshll.u32 (!%p241_p9), %s247_s9, 5 }
  0x2a   : > { %s527_s10 = smul.u32 (!%p241_p9), 144, %s247_s9  ;;  %s272_s12 = scalar_lea.vmem (!%p241_p9), [#allocation3], %s496_s11 }
  0x2c   : > { %s713_s17 = scalar_lea.vmem (!%p241_p9), [#allocation2], %s527_s10 }
  0x2e   : > { %v588_v18 = vmov 0   ;;  %v295_v19 = vld [vmem:[%s769_s2] sm:$0xff]  ;;  %v294_v23 = vld [vmem:[%s713_s17 + $0x88] sm:$0xff]  ;;  %v292_v25 = vld [vmem:[%s713_s17 + $0x78] sm:$0xff]  ;;  %vm307_vm0 = vcmask 588800   ;;  %s507_s18 = sshll.u32 (%p649_p5), %s489_s21, 4 }
  0x2f   : > { %553 = vset.pattern.permute.xlu0 %v588_v18  ;;  %554 = vset.pattern.permute.xlu1 %v588_v18  ;;  %v364_v20 = vld [vmem:[%s770_s3] sm:$0xff]  ;;  %v290_v27 = vld [vmem:[%s713_s17 + $0x68] sm:$0xff]  ;;  %v288_v29 = vld [vmem:[%s713_s17 + $0x58] sm:$0xff]  ;;  %s409_s14 = scalar_lea.vmem (%p649_p5), %s772_s5, %s507_s18 }
  0x30   : > { %299 = vperm.xlu0 %553, %v295_v19   ;;  %368 = vperm.xlu1 %554, %v364_v20   ;;  %v380_v21 = vld [vmem:[%s771_s4] sm:$0xff]  ;;  %v286_v31 = vld [vmem:[%s713_s17 + $0x48] sm:$0xff]  ;;  %v284_v33 = vld [vmem:[%s713_s17 + $0x38] sm:$0xff] }
  0x31   : > { %555 = vset.pattern.permute.xlu2 %v588_v18  ;;  %v293_v22 = vld [vmem:[%s713_s17 + $0x80] sm:$0xff]  ;;  %v291_v24 = vld [vmem:[%s713_s17 + $0x70] sm:$0xff]  ;;  %344 = vmatpush.msra.mxu1 %v294_v23  ;;  %v282_v35 = vld [vmem:[%s713_s17 + $0x28] sm:$0xff] }
  0x32   : > { %384 = vperm.xlu2 %555, %v380_v21   ;;  %321 = vmatpush.msra.mxu0 %v293_v22  ;;  %v289_v26 = vld [vmem:[%s713_s17 + $0x60] sm:$0xff]  ;;  %v287_v28 = vld [vmem:[%s713_s17 + $0x50] sm:$0xff]  ;;  %v280_v37 = vld [vmem:[%s713_s17 + $0x18] sm:$0xff] }
  0x33   : > { %508 = vmatpush.msra.mxu2 %v293_v22  ;;  %517 = vmatpush.msra.mxu3 %v294_v23  ;;  %v285_v30 = vld [vmem:[%s713_s17 + $0x40] sm:$0xff]  ;;  %v283_v32 = vld [vmem:[%s713_s17 + $0x30] sm:$0xff]  ;;  %v278_v39 = vld [vmem:[%s713_s17 + $0x8] sm:$0xff] }
  0x34   : > { %322 = vmatpush.msra.mxu0 %v291_v24  ;;  %345 = vmatpush.msra.mxu1 %v292_v25  ;;  %v281_v34 = vld [vmem:[%s713_s17 + $0x20] sm:$0xff]  ;;  %v279_v36 = vld [vmem:[%s713_s17 + $0x10] sm:$0xff]  ;;  %v276_v41 = vld [vmem:[%s768_s1 + $0x8] sm:$0xf] }
  0x35   : > { %509 = vmatpush.msra.mxu2 %v291_v24  ;;  %518 = vmatpush.msra.mxu3 %v292_v25  ;;  %v277_v38 = vld [vmem:[%s713_s17] sm:$0xff]  ;;  %v296_v42 = vld [vmem:[%s769_s2 + $0x8] sm:$0xf] }
  0x36   : > { %323 = vmatpush.msra.mxu0 %v289_v26  ;;  %346 = vmatpush.msra.mxu1 %v290_v27  ;;  %v275_v40 = vld [vmem:[%s768_s1] sm:$0xff]  ;;  %v365_v43 = vld [vmem:[%s770_s3 + $0x8] sm:$0xf] }
  0x37   : > { %510 = vmatpush.msra.mxu2 %v289_v26  ;;  %519 = vmatpush.msra.mxu3 %v290_v27  ;;  %v381_v44 = vld [vmem:[%s771_s4 + $0x8] sm:$0xf] }
  0x38   : > { %324 = vmatpush.msra.mxu0 %v287_v28  ;;  %347 = vmatpush.msra.mxu1 %v288_v29 }
  0x39   : > { %511 = vmatpush.msra.mxu2 %v287_v28  ;;  %520 = vmatpush.msra.mxu3 %v288_v29 }
  0x3a   : > { %325 = vmatpush.msra.mxu0 %v285_v30  ;;  %348 = vmatpush.msra.mxu1 %v286_v31 }
  0x3b   : > { %512 = vmatpush.msra.mxu2 %v285_v30  ;;  %521 = vmatpush.msra.mxu3 %v286_v31 }
  0x3c   : > { %326 = vmatpush.msra.mxu0 %v283_v32  ;;  %349 = vmatpush.msra.mxu1 %v284_v33 }
  0x3d   : > { %513 = vmatpush.msra.mxu2 %v283_v32  ;;  %522 = vmatpush.msra.mxu3 %v284_v33 }
  0x3e   : > { %327 = vmatpush.msra.mxu0 %v281_v34  ;;  %350 = vmatpush.msra.mxu1 %v282_v35 }
  0x3f   : > { %514 = vmatpush.msra.mxu2 %v281_v34  ;;  %523 = vmatpush.msra.mxu3 %v282_v35 }
  0x40   : > { %328 = vmatpush.msra.mxu0 %v279_v36  ;;  %351 = vmatpush.msra.mxu1 %v280_v37 }
  0x41   : > { %515 = vmatpush.msra.mxu2 %v279_v36  ;;  %524 = vmatpush.msra.mxu3 %v280_v37 }
  0x42   : > { %329 = vmatpush.msra.mxu0 %v277_v38  ;;  %352 = vmatpush.msra.mxu1 %v278_v39 }
  0x43   : > { %516 = vmatpush.msra.mxu2 %v277_v38  ;;  %525 = vmatpush.msra.mxu3 %v278_v39 }
  0x44   : > { %497 = vmatmul.msk.f32.vlgmr.msra.gmra.mxu0 %vm307_vm0, %v275_v40  ;;  %498 = vmatmul.msk.f32.vlgmr.msra.gmra.mxu2 %vm307_vm0, %v276_v41 }
  0x45   : > { %499 = vmatmul.msk.f32.vlgmr.msra.gmra.mxu1 %vm307_vm0, %v275_v40  ;;  %500 = vmatmul.msk.f32.vlgmr.msra.gmra.mxu3 %vm307_vm0, %v276_v41 }
  0x46   : > { %304 = vperm.xlu0 %553, %v296_v42   ;;  %373 = vperm.xlu1 %554, %v365_v43  }
  0x47   : > { %389 = vperm.xlu2 %555, %v381_v44  }
  0x8c   : > { %v385_v53 = vpop.permute.xlu2 %384 }
  0xa1   : > { %v390_v4 = vpop.permute.xlu2 %389 }
  0xa2   : > { %v300_v45 = vpop.permute.xlu0 %299  ;;  %v369_v50 = vpop.permute.xlu1 %368 }
  0xb8   : > { %v305_v51 = vpop.permute.xlu0 %304  ;;  %v374_v0 = vpop.permute.xlu1 %373 }
  0xc1   : > { %v331_v46 = vpop.f32.mrf.mxu0 }
  0xc2   : > { %v332_v47 = vadd.f32 %v331_v46, %v300_v45  ;;  %v354_v48 = vpop.f32.mrf.mxu1 }
  0xc3   : > { %v355_v49 = vadd.f32 %v354_v48, %v300_v45 }
  0xc4   : > { %556 = vtanh.f32 %v332_v47 }
  0xc5   : > { %558 = vtanh.f32 %v355_v49 }
  0xc7   : > { %v334_v52 = vpop.f32.mrf.mxu2 }
  0xc8   : > { %v335_v54 = vadd.f32 %v334_v52, %v305_v51  ;;  %v357_v55 = vpop.f32.mrf.mxu3 }
  0xc9   : > { %v358_v56 = vadd.f32 %v357_v55, %v305_v51 }
  0xca   : > { %v557_v57 = vpop.eup %556  ;;  %560 = vtanh.f32 %v335_v54 }
  0xcb   : > { %v559_v58 = vpop.eup %558  ;;  %v376_v59 = vmul.f32 %v557_v57, %v369_v50  ;;  %562 = vtanh.f32 %v358_v56 }
  0xcc   : > { %v377_v60 = vmul.f32 %v559_v58, %v369_v50 }
  0xcd   : > { %v392_v61 = vadd.f32 %v385_v53, %v376_v59 }
  0xce   : > { %v393_v62 = vadd.f32 %v385_v53, %v377_v60 }
  0xcf   : > { %396 = vst [vmem:[%s272_s12] sm:$0xff] %v392_v61 }
  0xd0   : > { %v561_v63 = vpop.eup %560  ;;  %397 = vst [vmem:[%s272_s12 + $0x8] sm:$0xff] %v393_v62 }
  0xd1   : > { %v563_v1 = vpop.eup %562  ;;  %v378_v2 = vmul.f32 %v561_v63, %v374_v0 }
  0xd2   : > { %v379_v3 = vmul.f32 %v563_v1, %v374_v0  ;;  %406 = sbr.rel (!%p649_p5) target bundleno = 223 (0xdf), region = 67 }
  0xd3   : > { %v394_v5 = vadd.f32 %v390_v4, %v378_v2 }
  0xd4   : > { %v395_v6 = vadd.f32 %v390_v4, %v379_v3 }
  0xd5   : > { %398 = vst [vmem:[%s272_s12 + $0x10] sm:$0xf] %v394_v5 }
  0xd6   : > { %399 = vst [vmem:[%s272_s12 + $0x18] sm:$0xf] %v395_v6  ;;  %v422_v7 = vld [vmem:[%s272_s12] sm:$0xff] (%p649_p5) }
  0xd7   : > { %v424_v8 = vld [vmem:[%s272_s12 + $0x8] sm:$0xff]  ;;  %423 = vst [vmem:[%s409_s14] sm:$0xff] %v422_v7 }
  0xd8   : > { %425 = vst [vmem:[%s409_s14 + $0x8] sm:$0xff] %v424_v8 }
  0xdc   : > { %v426_v9 = vld [vmem:[%s272_s12 + $0x10] sm:$0xff] }
  0xdd   : > { %v428_v10 = vld [vmem:[%s272_s12 + $0x18] sm:$0xff]  ;;  %427 = vst [vmem:[%s409_s14 + $0x20] sm:$0xff] %v426_v9 }
  0xde   : > { %429 = vst [vmem:[%s409_s14 + $0x28] sm:$0xff] %v428_v10 }
  0xdf PF: > { %p12_p10 = scmp.ge.s32.totalorder %s636_s22, 4   ;;  %s774_s18 = smov %s582_s19 }
  0xe0   : > { %s775_s19 = smov %s647_s25  ;;  %s776_s20 = smov %s636_s22 }
  0xe1   :  { %14 = sbr.rel (!%p12_p10) target bundleno = 2 (0x2), region = 121 }

</bundles_post_ra>
